<compile_context>
chip_gen: v7x
topology: tpu7x:2x2x1
jax: 0.10.0
libtpu: 0.0.40
codegen_flags: <defaults>
</compile_context>

<pallas_src>
import functools
import math

import jax
import jax.numpy as jnp
from jax.experimental import pallas as pl
from jax.experimental.pallas import tpu as pltpu

# ----------------------------- small BERT config -----------------------------
VOCAB = 128
HIDDEN = 32
N_LAYERS = 2
N_HEADS = 4
HEAD_DIM = HIDDEN // N_HEADS
INTERMEDIATE = 64
MAX_POS = 16
NUM_LABELS = 6
SEQ = 8
BATCH = 2


def _full_spec(shape):
    """BlockSpec covering the whole array, single grid step."""
    n = len(shape)
    return pl.BlockSpec(shape, lambda i, _n=n: (0,) * _n)


def _ln(x, g, b, eps=1e-12):
    """Row-wise LayerNorm on a value; g,b are [1,H]."""
    mu = jnp.mean(x, axis=-1, keepdims=True)
    var = jnp.mean(jnp.square(x - mu), axis=-1, keepdims=True)
    return (x - mu) * jax.lax.rsqrt(var + eps) * g + b


# ----------------------- kernel 1: embedding + LN + mask -----------------------
def _embed_ln_kernel(ids_ref, wemb_ref, pos_ref, type_ref, g_ref, b_ref,
                     emb_ref, mask_ref, *, vocab):
    ids = ids_ref[...]                                            # [M, 1] int32
    m_rows = ids.shape[0]
    # embedding gather as one-hot matmul (rides the MXU, no dynamic gather needed)
    iota = jax.lax.broadcasted_iota(jnp.int32, (m_rows, vocab), 1)
    onehot = (iota == ids).astype(jnp.float32)                    # [M, VOCAB]
    emb = jnp.dot(onehot, wemb_ref[...], preferred_element_type=jnp.float32)
    emb = emb + pos_ref[...] + type_ref[...]                      # pos + type (type id = 0)
    emb_ref[...] = _ln(emb, g_ref[...], b_ref[...])
    # BERT-style additive attention mask: 0 where token != 0, -10000 where padding
    mask_ref[...] = jnp.where(ids == 0, -10000.0, 0.0).astype(jnp.float32)


def embed_ln(ids_flat, word_emb, pos_tiled, type_row, g, b):
    M = ids_flat.shape[0]
    V, H = word_emb.shape
    kern = functools.partial(_embed_ln_kernel, vocab=V)
    return pl.pallas_call(
        kern,
        out_shape=(jax.ShapeDtypeStruct((M, H), jnp.float32),
                   jax.ShapeDtypeStruct((M, 1), jnp.float32)),
        grid=(1,),
        in_specs=[_full_spec((M, 1)), _full_spec((V, H)), _full_spec((M, H)),
                  _full_spec((1, H)), _full_spec((1, H)), _full_spec((1, H))],
        out_specs=(_full_spec((M, H)), _full_spec((M, 1))),
    )(ids_flat, word_emb, pos_tiled, type_row, g, b)


# ----------------------- kernel 2: fused encoder (all layers) -----------------------
def _encoder_layer_kernel(h0_ref, mask_ref,
                          qkv_w_ref, qkv_b_ref, ao_w_ref, ao_b_ref,
                          ln1_g_ref, ln1_b_ref, i_w_ref, i_b_ref,
                          o_w_ref, o_b_ref, ln2_g_ref, ln2_b_ref,
                          out_ref, *, Bt, S, H, NH, D):
    layer = pl.program_id(1)

    # initialize the resident activation carry from the embedding output
    @pl.when(layer == 0)
    def _():
        out_ref[...] = h0_ref[...]

    h = out_ref[...]                                              # [Bt*S, H]
    scale = 1.0 / math.sqrt(D)

    # fused QKV projection: one [H, 3H] matmul instead of three [H, H] launches
    qkv = jnp.dot(h, qkv_w_ref[0], preferred_element_type=jnp.float32) + qkv_b_ref[0]
    mask2d = mask_ref[0]                                          # [Bt, S] additive

    # attention: heads sliced in-kernel (static column slices), no HBM relayouts
    ctx_rows = []
    for b in range(Bt):
        r0 = b * S
        qb = qkv[r0:r0 + S, 0:H]
        kb = qkv[r0:r0 + S, H:2 * H]
        vb = qkv[r0:r0 + S, 2 * H:3 * H]
        madd = mask2d[b:b + 1, :]                                 # [1, S] -> bcast over queries
        heads = []
        for hh in range(NH):
            c0 = hh * D
            qh = qb[:, c0:c0 + D]
            kh = kb[:, c0:c0 + D]
            vh = vb[:, c0:c0 + D]
            s = jnp.dot(qh, kh.T, preferred_element_type=jnp.float32) * scale + madd
            s = s - jnp.max(s, axis=-1, keepdims=True)
            p = jnp.exp(s)
            p = p * pl.reciprocal(jnp.sum(p, axis=-1, keepdims=True), approx=True)
            heads.append(jnp.dot(p, vh, preferred_element_type=jnp.float32))
        ctx_rows.append(jnp.concatenate(heads, axis=1))           # [S, H]
    ctx = jnp.concatenate(ctx_rows, axis=0)                       # [Bt*S, H]

    # attention output projection + residual + LayerNorm (fused)
    attn = jnp.dot(ctx, ao_w_ref[0], preferred_element_type=jnp.float32) + ao_b_ref[0]
    h1 = _ln(attn + h, ln1_g_ref[0], ln1_b_ref[0])

    # FFN (+ GELU) + residual + LayerNorm (fused)
    inter = jnp.dot(h1, i_w_ref[0], preferred_element_type=jnp.float32) + i_b_ref[0]
    inter = jax.nn.gelu(inter, approximate=True)   # TODO(synk): HF BERT uses exact erf-GELU
    ffn = jnp.dot(inter, o_w_ref[0], preferred_element_type=jnp.float32) + o_b_ref[0]
    out_ref[...] = _ln(ffn + h1, ln2_g_ref[0], ln2_b_ref[0])


def encoder_forward(h0, mask_add, p):
    M, H = h0.shape                        # M = 2 * Bt * S (both towers)
    n_tower, Bt, S = mask_add.shape
    rows = Bt * S
    L = p["qkv_w"].shape[0]
    D = H // N_HEADS
    I = p["i_w"].shape[2]
    kern = functools.partial(_encoder_layer_kernel, Bt=Bt, S=S, H=H, NH=N_HEADS, D=D)

    wmap = lambda t, l: (l, 0, 0)          # per-layer weight tile, pipelined over layers
    act_spec = pl.BlockSpec((rows, H), lambda t, l: (t, 0))  # per-tower activation carry

    return pl.pallas_call(
        kern,
        out_shape=jax.ShapeDtypeStruct((M, H), jnp.float32),
        grid=(n_tower, L),
        in_specs=[
            act_spec,
            pl.BlockSpec((1, Bt, S), lambda t, l: (t, 0, 0)),
            pl.BlockSpec((1, H, 3 * H), wmap),
            pl.BlockSpec((1, 1, 3 * H), wmap),
            pl.BlockSpec((1, H, H), wmap),
            pl.BlockSpec((1, 1, H), wmap),
            pl.BlockSpec((1, 1, H), wmap),
            pl.BlockSpec((1, 1, H), wmap),
            pl.BlockSpec((1, H, I), wmap),
            pl.BlockSpec((1, 1, I), wmap),
            pl.BlockSpec((1, I, H), wmap),
            pl.BlockSpec((1, 1, H), wmap),
            pl.BlockSpec((1, 1, H), wmap),
            pl.BlockSpec((1, 1, H), wmap),
        ],
        out_specs=act_spec,
        compiler_params=pltpu.CompilerParams(
            dimension_semantics=("parallel", "arbitrary")),
    )(h0, mask_add,
      p["qkv_w"], p["qkv_b"], p["ao_w"], p["ao_b"],
      p["ln1_g"], p["ln1_b"], p["i_w"], p["i_b"],
      p["o_w"], p["o_b"], p["ln2_g"], p["ln2_b"])


# ----------------------- kernel 3: pooler + concat + credit + classifier -----------------------
def _head_kernel(h_ref, pw_ref, pb_ref, credit_ref, cw_ref, cb_ref, o_ref, *, n_cls, S):
    h = h_ref[...]                                                # [2B*S, H]
    M = h.shape[0]
    # CLS-row selection as a one-hot matmul (row b picks token b*S)
    row_sel = jax.lax.broadcasted_iota(jnp.int32, (n_cls, M), 0) * S
    col_idx = jax.lax.broadcasted_iota(jnp.int32, (n_cls, M), 1)
    sel = (row_sel == col_idx).astype(jnp.float32)                # [2B, 2B*S]
    cls = jnp.dot(sel, h, preferred_element_type=jnp.float32)     # [2B, H]

    pooled = jnp.tanh(
        jnp.dot(cls, pw_ref[...], preferred_element_type=jnp.float32) + pb_ref[...])
    # dropout(pooled) is identity in eval mode
    half = n_cls // 2
    feat = jnp.concatenate([pooled[:half], pooled[half:]], axis=1) + credit_ref[...]
    o_ref[...] = jnp.dot(feat, cw_ref[...], preferred_element_type=jnp.float32) + cb_ref[...]


def classifier_head(h_final, pool_w, pool_b, credit, cls_w, cls_b, *, n_cls, S):
    M, H = h_final.shape
    Bt, twoH = credit.shape
    NL = cls_w.shape[1]
    kern = functools.partial(_head_kernel, n_cls=n_cls, S=S)
    return pl.pallas_call(
        kern,
        out_shape=jax.ShapeDtypeStruct((Bt, NL), jnp.float32),
        grid=(1,),
        in_specs=[_full_spec((M, H)), _full_spec((H, H)), _full_spec((1, H)),
                  _full_spec((Bt, twoH)), _full_spec((twoH, NL)), _full_spec((1, NL))],
        out_specs=_full_spec((Bt, NL)),
    )(h_final, pool_w, pool_b, credit, cls_w, cls_b)


# ------------------------------ model forward ------------------------------
def model_forward(input_ids1, input_ids2, credit_sc, params):
    # both siamese towers batched into one BERT pass (weights are shared)
    ids = jnp.concatenate([input_ids1, input_ids2], axis=0)       # [2B, S]
    B2, S = ids.shape
    Bt = B2 // 2
    M = B2 * S

    ids_flat = ids.reshape(M, 1).astype(jnp.int32)
    pos_tiled = jnp.tile(params["pos_emb"][:S], (B2, 1))          # [M, H] (constant prep / glue)
    type_row = params["type_emb"][0:1]                            # token_type_ids = 0

    h0, mask_flat = embed_ln(ids_flat, params["word_emb"], pos_tiled, type_row,
                             params["emb_ln_g"], params["emb_ln_b"])
    mask_add = mask_flat.reshape(2, Bt, S)                        # [tower, B, S] additive mask

    h_final = encoder_forward(h0, mask_add, params)               # [M, H]

    logits = classifier_head(h_final, params["pool_w"], params["pool_b"],
                             credit_sc, params["cls_w"], params["cls_b"],
                             n_cls=B2, S=S)
    return logits


# ------------------------------ parameter init ------------------------------
def init_params(key):
    std = 0.02
    keys = iter(jax.random.split(key, 64))

    def nrm(shape, s=std):
        return (s * jax.random.normal(next(keys), shape)).astype(jnp.float32)

    L = N_LAYERS
    params = {
        "word_emb": nrm((VOCAB, HIDDEN)),
        "pos_emb": nrm((MAX_POS, HIDDEN)),
        "type_emb": nrm((2, HIDDEN)),
        "emb_ln_g": jnp.ones((1, HIDDEN), jnp.float32),
        "emb_ln_b": jnp.zeros((1, HIDDEN), jnp.float32),
        # per-layer weights stacked along a leading layer axis; QKV fused to [H, 3H]
        "qkv_w": nrm((L, HIDDEN, 3 * HIDDEN)),
        "qkv_b": jnp.zeros((L, 1, 3 * HIDDEN), jnp.float32),
        "ao_w": nrm((L, HIDDEN, HIDDEN)),
        "ao_b": jnp.zeros((L, 1, HIDDEN), jnp.float32),
        "ln1_g": jnp.ones((L, 1, HIDDEN), jnp.float32),
        "ln1_b": jnp.zeros((L, 1, HIDDEN), jnp.float32),
        "i_w": nrm((L, HIDDEN, INTERMEDIATE)),
        "i_b": jnp.zeros((L, 1, INTERMEDIATE), jnp.float32),
        "o_w": nrm((L, INTERMEDIATE, HIDDEN)),
        "o_b": jnp.zeros((L, 1, HIDDEN), jnp.float32),
        "ln2_g": jnp.ones((L, 1, HIDDEN), jnp.float32),
        "ln2_b": jnp.zeros((L, 1, HIDDEN), jnp.float32),
        "pool_w": nrm((HIDDEN, HIDDEN)),
        "pool_b": jnp.zeros((1, HIDDEN), jnp.float32),
        # classifier: xavier_normal_ on torch weight [num_labels, 2H]; stored transposed.
        "cls_w": nrm((2 * HIDDEN, NUM_LABELS),
                     s=math.sqrt(2.0 / (2 * HIDDEN + NUM_LABELS))),
        "cls_b": jnp.zeros((1, NUM_LABELS), jnp.float32),
    }
    return params


# ----------------------------------- main -----------------------------------
if __name__ == "__main__":
    key = jax.random.PRNGKey(0)
    k_param, k_id1, k_id2, k_cs = jax.random.split(key, 4)

    params = init_params(k_param)

    # ids in [0, VOCAB); zeros act as padding (attention_mask = ids != 0)
    input_ids1 = jax.random.randint(k_id1, (BATCH, SEQ), 0, VOCAB, dtype=jnp.int32)
    input_ids2 = jax.random.randint(k_id2, (BATCH, SEQ), 0, VOCAB, dtype=jnp.int32)
    input_ids1 = input_ids1.at[:, -2:].set(0)   # some padding tokens
    input_ids2 = input_ids2.at[:, -1:].set(0)
    credit_sc = jax.random.normal(k_cs, (BATCH, 2 * HIDDEN), dtype=jnp.float32)

    logits = jax.jit(model_forward)(input_ids1, input_ids2, credit_sc, params)
    logits = jax.block_until_ready(logits)
    assert logits.shape == (BATCH, NUM_LABELS)
    assert bool(jnp.all(jnp.isfinite(logits)))
    print("KERNEL_OK")
</pallas_src>

<mosaic_0001>
module attributes {stable_mosaic.version = 11 : i64} {
  func.func @_embed_ln_kernel(%arg0: i32, %arg1: memref<32x1xi32, #tpu.memory_space<vmem>>, %arg2: memref<128x32xf32, #tpu.memory_space<vmem>>, %arg3: memref<32x32xf32, #tpu.memory_space<vmem>>, %arg4: memref<1x32xf32, #tpu.memory_space<vmem>>, %arg5: memref<1x32xf32, #tpu.memory_space<vmem>>, %arg6: memref<1x32xf32, #tpu.memory_space<vmem>>, %arg7: memref<32x32xf32, #tpu.memory_space<vmem>>, %arg8: memref<32x1xf32, #tpu.memory_space<vmem>>) attributes {dimension_semantics = [#tpu.dimension_semantics<arbitrary>], iteration_bounds = array<i64: 1>, scalar_prefetch = 0 : i64, scratch_operands = 0 : i64, tpu.core_type = #tpu.core_type<tc>, window_params = [{pipeline_mode = #tpu.pipeline_mode<synchronous>, transform_indices = @transform_0, window_bounds = array<i64: 32, 1>}, {pipeline_mode = #tpu.pipeline_mode<synchronous>, transform_indices = @transform_1, window_bounds = array<i64: 128, 32>}, {pipeline_mode = #tpu.pipeline_mode<synchronous>, transform_indices = @transform_2, window_bounds = array<i64: 32, 32>}, {pipeline_mode = #tpu.pipeline_mode<synchronous>, transform_indices = @transform_3, window_bounds = array<i64: 1, 32>}, {pipeline_mode = #tpu.pipeline_mode<synchronous>, transform_indices = @transform_4, window_bounds = array<i64: 1, 32>}, {pipeline_mode = #tpu.pipeline_mode<synchronous>, transform_indices = @transform_5, window_bounds = array<i64: 1, 32>}, {pipeline_mode = #tpu.pipeline_mode<synchronous>, transform_indices = @transform_6, window_bounds = array<i64: 32, 32>}, {pipeline_mode = #tpu.pipeline_mode<synchronous>, transform_indices = @transform_7, window_bounds = array<i64: 32, 1>}]} {
    %c0 = arith.constant 0 : index
    %c0_0 = arith.constant 0 : index
    %0 = vector.load %arg1[%c0, %c0_0] : memref<32x1xi32, #tpu.memory_space<vmem>>, vector<32x1xi32>
    %1 = tpu.iota {dimensions = array<i32: 1>} : vector<32x128xi32>
    %2 = vector.broadcast %0 : vector<32x1xi32> to vector<32x128xi32>
    %3 = arith.cmpi eq, %1, %2 : vector<32x128xi32>
    %4 = arith.extui %3 : vector<32x128xi1> to vector<32x128xi32>
    %5 = arith.sitofp %4 : vector<32x128xi32> to vector<32x128xf32>
    %c0_1 = arith.constant 0 : index
    %c0_2 = arith.constant 0 : index
    %6 = vector.load %arg2[%c0_1, %c0_2] : memref<128x32xf32, #tpu.memory_space<vmem>>, vector<128x32xf32>
    %cst = arith.constant dense<0.000000e+00> : vector<32x32xf32>
    %7 = tpu.matmul %5, %6, %cst {dimension_numbers = #tpu.dot_dimension_numbers<[1], [0], [0], [1], [0, 0, 1, 1], [], []>} : vector<32x128xf32>, vector<128x32xf32>, vector<32x32xf32> -> vector<32x32xf32>
    %c0_3 = arith.constant 0 : index
    %c0_4 = arith.constant 0 : index
    %8 = vector.load %arg3[%c0_3, %c0_4] : memref<32x32xf32, #tpu.memory_space<vmem>>, vector<32x32xf32>
    %9 = arith.addf %7, %8 : vector<32x32xf32>
    %c0_5 = arith.constant 0 : index
    %c0_6 = arith.constant 0 : index
    %10 = vector.load %arg4[%c0_5, %c0_6] : memref<1x32xf32, #tpu.memory_space<vmem>>, vector<1x32xf32>
    %11 = vector.broadcast %10 : vector<1x32xf32> to vector<32x32xf32>
    %12 = arith.addf %9, %11 : vector<32x32xf32>
    %c0_7 = arith.constant 0 : index
    %c0_8 = arith.constant 0 : index
    %13 = vector.load %arg5[%c0_7, %c0_8] : memref<1x32xf32, #tpu.memory_space<vmem>>, vector<1x32xf32>
    %c0_9 = arith.constant 0 : index
    %c0_10 = arith.constant 0 : index
    %14 = vector.load %arg6[%c0_9, %c0_10] : memref<1x32xf32, #tpu.memory_space<vmem>>, vector<1x32xf32>
    %cst_11 = arith.constant dense<0.000000e+00> : vector<32xf32>
    %15 = vector.multi_reduction <add>, %12, %cst_11 [1] : vector<32x32xf32> to vector<32xf32>
    %16 = vector.shape_cast %15 : vector<32xf32> to vector<32x1xf32>
    %cst_12 = arith.constant 3.200000e+01 : f32
    %17 = vector.broadcast %cst_12 : f32 to vector<32x1xf32>
    %18 = arith.divf %16, %17 : vector<32x1xf32>
    %19 = vector.broadcast %18 : vector<32x1xf32> to vector<32x32xf32>
    %20 = arith.subf %12, %19 : vector<32x32xf32>
    %21 = arith.mulf %20, %20 : vector<32x32xf32>
    %cst_13 = arith.constant dense<0.000000e+00> : vector<32xf32>
    %22 = vector.multi_reduction <add>, %21, %cst_13 [1] : vector<32x32xf32> to vector<32xf32>
    %23 = vector.shape_cast %22 : vector<32xf32> to vector<32x1xf32>
    %cst_14 = arith.constant 3.200000e+01 : f32
    %24 = vector.broadcast %cst_14 : f32 to vector<32x1xf32>
    %25 = arith.divf %23, %24 : vector<32x1xf32>
    %26 = vector.broadcast %18 : vector<32x1xf32> to vector<32x32xf32>
    %27 = arith.subf %12, %26 : vector<32x32xf32>
    %cst_15 = arith.constant 9.99999996E-13 : f32
    %28 = vector.broadcast %cst_15 : f32 to vector<32x1xf32>
    %29 = arith.addf %25, %28 : vector<32x1xf32>
    %30 = math.rsqrt %29 : vector<32x1xf32>
    %31 = vector.broadcast %30 : vector<32x1xf32> to vector<32x32xf32>
    %32 = arith.mulf %27, %31 : vector<32x32xf32>
    %33 = vector.broadcast %13 : vector<1x32xf32> to vector<32x32xf32>
    %34 = arith.mulf %32, %33 : vector<32x32xf32>
    %35 = vector.broadcast %14 : vector<1x32xf32> to vector<32x32xf32>
    %36 = arith.addf %34, %35 : vector<32x32xf32>
    %c0_16 = arith.constant 0 : index
    %c0_17 = arith.constant 0 : index
    %37 = vector.load %arg7[%c0_16, %c0_17] : memref<32x32xf32, #tpu.memory_space<vmem>>, vector<32x32xf32>
    tpu.vector_store %arg7[%c0_16, %c0_17], %36 {strides = array<i32>} : memref<32x32xf32, #tpu.memory_space<vmem>>, vector<32x32xf32>,
    %c0_i32 = arith.constant 0 : i32
    %38 = vector.broadcast %c0_i32 : i32 to vector<32x1xi32>
    %39 = arith.cmpi eq, %0, %38 : vector<32x1xi32>
    %cst_18 = arith.constant -1.000000e+04 : f32
    %cst_19 = arith.constant 0.000000e+00 : f32
    %40 = vector.broadcast %cst_18 : f32 to vector<32x1xf32>
    %41 = vector.broadcast %cst_19 : f32 to vector<32x1xf32>
    %42 = arith.select %39, %40, %41 : vector<32x1xi1>, vector<32x1xf32>
    %c0_20 = arith.constant 0 : index
    %c0_21 = arith.constant 0 : index
    %43 = vector.load %arg8[%c0_20, %c0_21] : memref<32x1xf32, #tpu.memory_space<vmem>>, vector<32x1xf32>
    tpu.vector_store %arg8[%c0_20, %c0_21], %42 {strides = array<i32>} : memref<32x1xf32, #tpu.memory_space<vmem>>, vector<32x1xf32>,
    return
  }
  func.func @transform_0(%arg0: i32) -> (i32, i32) {
    %c0_i32 = arith.constant 0 : i32
    %c0_i32_0 = arith.constant 0 : i32
    %c0_i32_1 = arith.constant 0 : i32
    return %c0_i32, %c0_i32_0 : i32, i32
  }
  func.func @transform_1(%arg0: i32) -> (i32, i32) {
    %c0_i32 = arith.constant 0 : i32
    %c0_i32_0 = arith.constant 0 : i32
    %c0_i32_1 = arith.constant 0 : i32
    return %c0_i32, %c0_i32_0 : i32, i32
  }
  func.func @transform_2(%arg0: i32) -> (i32, i32) {
    %c0_i32 = arith.constant 0 : i32
    %c0_i32_0 = arith.constant 0 : i32
    %c0_i32_1 = arith.constant 0 : i32
    return %c0_i32, %c0_i32_0 : i32, i32
  }
  func.func @transform_3(%arg0: i32) -> (i32, i32) {
    %c0_i32 = arith.constant 0 : i32
    %c0_i32_0 = arith.constant 0 : i32
    %c0_i32_1 = arith.constant 0 : i32
    return %c0_i32, %c0_i32_0 : i32, i32
  }
  func.func @transform_4(%arg0: i32) -> (i32, i32) {
    %c0_i32 = arith.constant 0 : i32
    %c0_i32_0 = arith.constant 0 : i32
    %c0_i32_1 = arith.constant 0 : i32
    return %c0_i32, %c0_i32_0 : i32, i32
  }
  func.func @transform_5(%arg0: i32) -> (i32, i32) {
    %c0_i32 = arith.constant 0 : i32
    %c0_i32_0 = arith.constant 0 : i32
    %c0_i32_1 = arith.constant 0 : i32
    return %c0_i32, %c0_i32_0 : i32, i32
  }
  func.func @transform_6(%arg0: i32) -> (i32, i32) {
    %c0_i32 = arith.constant 0 : i32
    %c0_i32_0 = arith.constant 0 : i32
    %c0_i32_1 = arith.constant 0 : i32
    return %c0_i32, %c0_i32_0 : i32, i32
  }
  func.func @transform_7(%arg0: i32) -> (i32, i32) {
    %c0_i32 = arith.constant 0 : i32
    %c0_i32_0 = arith.constant 0 : i32
    %c0_i32_1 = arith.constant 0 : i32
    return %c0_i32, %c0_i32_0 : i32, i32
  }
}

module attributes {stable_mosaic.version = 11 : i64} {
  func.func @_encoder_layer_kernel(%arg0: i32, %arg1: i32, %arg2: memref<16x32xf32, #tpu.memory_space<vmem>>, %arg3: memref<1x2x8xf32, #tpu.memory_space<vmem>>, %arg4: memref<1x32x96xf32, #tpu.memory_space<vmem>>, %arg5: memref<1x1x96xf32, #tpu.memory_space<vmem>>, %arg6: memref<1x32x32xf32, #tpu.memory_space<vmem>>, %arg7: memref<1x1x32xf32, #tpu.memory_space<vmem>>, %arg8: memref<1x1x32xf32, #tpu.memory_space<vmem>>, %arg9: memref<1x1x32xf32, #tpu.memory_space<vmem>>, %arg10: memref<1x32x64xf32, #tpu.memory_space<vmem>>, %arg11: memref<1x1x64xf32, #tpu.memory_space<vmem>>, %arg12: memref<1x64x32xf32, #tpu.memory_space<vmem>>, %arg13: memref<1x1x32xf32, #tpu.memory_space<vmem>>, %arg14: memref<1x1x32xf32, #tpu.memory_space<vmem>>, %arg15: memref<1x1x32xf32, #tpu.memory_space<vmem>>, %arg16: memref<16x32xf32, #tpu.memory_space<vmem>>) attributes {dimension_semantics = [#tpu.dimension_semantics<parallel>, #tpu.dimension_semantics<arbitrary>], iteration_bounds = array<i64: 2, 2>, scalar_prefetch = 0 : i64, scratch_operands = 0 : i64, tpu.core_type = #tpu.core_type<tc>, window_params = [{transform_indices = @transform_0, window_bounds = array<i64: 16, 32>}, {transform_indices = @transform_1, window_bounds = array<i64: 1, 2, 8>}, {transform_indices = @transform_2, window_bounds = array<i64: 1, 32, 96>}, {transform_indices = @transform_3, window_bounds = array<i64: 1, 1, 96>}, {transform_indices = @transform_4, window_bounds = array<i64: 1, 32, 32>}, {transform_indices = @transform_5, window_bounds = array<i64: 1, 1, 32>}, {transform_indices = @transform_6, window_bounds = array<i64: 1, 1, 32>}, {transform_indices = @transform_7, window_bounds = array<i64: 1, 1, 32>}, {transform_indices = @transform_8, window_bounds = array<i64: 1, 32, 64>}, {transform_indices = @transform_9, window_bounds = array<i64: 1, 1, 64>}, {transform_indices = @transform_10, window_bounds = array<i64: 1, 64, 32>}, {transform_indices = @transform_11, window_bounds = array<i64: 1, 1, 32>}, {transform_indices = @transform_12, window_bounds = array<i64: 1, 1, 32>}, {transform_indices = @transform_13, window_bounds = array<i64: 1, 1, 32>}, {transform_indices = @transform_14, window_bounds = array<i64: 16, 32>}]} {
    %c0_i32 = arith.constant 0 : i32
    %0 = arith.cmpi eq, %arg1, %c0_i32 : i32
    %1 = arith.extui %0 : i1 to i32
    %c0_i32_0 = arith.constant 0 : i32
    %2 = arith.cmpi ne, %1, %c0_i32_0 : i32
    scf.if %2 {
      %c0_100 = arith.constant 0 : index
      %c0_101 = arith.constant 0 : index
      %273 = vector.load %arg2[%c0_100, %c0_101] : memref<16x32xf32, #tpu.memory_space<vmem>>, vector<16x32xf32>
      %c0_102 = arith.constant 0 : index
      %c0_103 = arith.constant 0 : index
      %274 = vector.load %arg16[%c0_102, %c0_103] : memref<16x32xf32, #tpu.memory_space<vmem>>, vector<16x32xf32>
      tpu.vector_store %arg16[%c0_102, %c0_103], %273 {strides = array<i32>} : memref<16x32xf32, #tpu.memory_space<vmem>>, vector<16x32xf32>,
    } else {
    }
    %c0 = arith.constant 0 : index
    %c0_1 = arith.constant 0 : index
    %3 = vector.load %arg16[%c0, %c0_1] : memref<16x32xf32, #tpu.memory_space<vmem>>, vector<16x32xf32>
    %c0_2 = arith.constant 0 : index
    %c0_3 = arith.constant 0 : index
    %c0_4 = arith.constant 0 : index
    %4 = vector.load %arg4[%c0_2, %c0_3, %c0_4] : memref<1x32x96xf32, #tpu.memory_space<vmem>>, vector<1x32x96xf32>
    %5 = vector.shape_cast %4 : vector<1x32x96xf32> to vector<32x96xf32>
    %cst = arith.constant dense<0.000000e+00> : vector<16x96xf32>
    %6 = tpu.matmul %3, %5, %cst {dimension_numbers = #tpu.dot_dimension_numbers<[1], [0], [0], [1], [0, 0, 1, 1], [], []>} : vector<16x32xf32>, vector<32x96xf32>, vector<16x96xf32> -> vector<16x96xf32>
    %c0_5 = arith.constant 0 : index
    %c0_6 = arith.constant 0 : index
    %c0_7 = arith.constant 0 : index
    %7 = vector.load %arg5[%c0_5, %c0_6, %c0_7] : memref<1x1x96xf32, #tpu.memory_space<vmem>>, vector<1x1x96xf32>
    %8 = vector.shape_cast %7 : vector<1x1x96xf32> to vector<1x96xf32>
    %9 = vector.broadcast %8 : vector<1x96xf32> to vector<16x96xf32>
    %10 = arith.addf %6, %9 : vector<16x96xf32>
    %c0_8 = arith.constant 0 : index
    %c0_9 = arith.constant 0 : index
    %c0_10 = arith.constant 0 : index
    %11 = vector.load %arg3[%c0_8, %c0_9, %c0_10] : memref<1x2x8xf32, #tpu.memory_space<vmem>>, vector<1x2x8xf32>
    %12 = vector.shape_cast %11 : vector<1x2x8xf32> to vector<2x8xf32>
    %13 = vector.extract_strided_slice %10 {offsets = [0, 0], sizes = [8, 32], strides = [1, 1]} : vector<16x96xf32> to vector<8x32xf32>
    %14 = vector.extract_strided_slice %10 {offsets = [0, 32], sizes = [8, 32], strides = [1, 1]} : vector<16x96xf32> to vector<8x32xf32>
    %15 = vector.extract_strided_slice %10 {offsets = [0, 64], sizes = [8, 32], strides = [1, 1]} : vector<16x96xf32> to vector<8x32xf32>
    %16 = vector.extract_strided_slice %12 {offsets = [0, 0], sizes = [1, 8], strides = [1, 1]} : vector<2x8xf32> to vector<1x8xf32>
    %17 = vector.extract_strided_slice %13 {offsets = [0, 0], sizes = [8, 8], strides = [1, 1]} : vector<8x32xf32> to vector<8x8xf32>
    %18 = vector.extract_strided_slice %14 {offsets = [0, 0], sizes = [8, 8], strides = [1, 1]} : vector<8x32xf32> to vector<8x8xf32>
    %19 = vector.extract_strided_slice %15 {offsets = [0, 0], sizes = [8, 8], strides = [1, 1]} : vector<8x32xf32> to vector<8x8xf32>
    %20 = tpu.transpose %18, [1, 0] : vector<8x8xf32> -> vector<8x8xf32>
    %cst_11 = arith.constant dense<0.000000e+00> : vector<8x8xf32>
    %21 = tpu.matmul %17, %20, %cst_11 {dimension_numbers = #tpu.dot_dimension_numbers<[1], [0], [0], [1], [0, 0, 1, 1], [], []>} : vector<8x8xf32>, vector<8x8xf32>, vector<8x8xf32> -> vector<8x8xf32>
    %cst_12 = arith.constant 0.353553385 : f32
    %22 = vector.broadcast %cst_12 : f32 to vector<8x8xf32>
    %23 = arith.mulf %21, %22 : vector<8x8xf32>
    %24 = vector.broadcast %16 : vector<1x8xf32> to vector<8x8xf32>
    %25 = arith.addf %23, %24 : vector<8x8xf32>
    %cst_13 = arith.constant dense<0xFF800000> : vector<8xf32>
    %26 = vector.multi_reduction <maximumf>, %25, %cst_13 [1] : vector<8x8xf32> to vector<8xf32>
    %27 = vector.shape_cast %26 : vector<8xf32> to vector<8x1xf32>
    %28 = vector.broadcast %27 : vector<8x1xf32> to vector<8x8xf32>
    %29 = arith.subf %25, %28 : vector<8x8xf32>
    %30 = math.exp %29 : vector<8x8xf32>
    %cst_14 = arith.constant dense<0.000000e+00> : vector<8xf32>
    %31 = vector.multi_reduction <add>, %30, %cst_14 [1] : vector<8x8xf32> to vector<8xf32>
    %32 = vector.shape_cast %31 : vector<8xf32> to vector<8x1xf32>
    %33 = tpu.reciprocal %32 {approx = true} : vector<8x1xf32> -> vector<8x1xf32>
    %34 = vector.broadcast %33 : vector<8x1xf32> to vector<8x8xf32>
    %35 = arith.mulf %30, %34 : vector<8x8xf32>
    %cst_15 = arith.constant dense<0.000000e+00> : vector<8x8xf32>
    %36 = tpu.matmul %35, %19, %cst_15 {dimension_numbers = #tpu.dot_dimension_numbers<[1], [0], [0], [1], [0, 0, 1, 1], [], []>} : vector<8x8xf32>, vector<8x8xf32>, vector<8x8xf32> -> vector<8x8xf32>
    %37 = vector.extract_strided_slice %13 {offsets = [0, 8], sizes = [8, 8], strides = [1, 1]} : vector<8x32xf32> to vector<8x8xf32>
    %38 = vector.extract_strided_slice %14 {offsets = [0, 8], sizes = [8, 8], strides = [1, 1]} : vector<8x32xf32> to vector<8x8xf32>
    %39 = vector.extract_strided_slice %15 {offsets = [0, 8], sizes = [8, 8], strides = [1, 1]} : vector<8x32xf32> to vector<8x8xf32>
    %40 = tpu.transpose %38, [1, 0] : vector<8x8xf32> -> vector<8x8xf32>
    %cst_16 = arith.constant dense<0.000000e+00> : vector<8x8xf32>
    %41 = tpu.matmul %37, %40, %cst_16 {dimension_numbers = #tpu.dot_dimension_numbers<[1], [0], [0], [1], [0, 0, 1, 1], [], []>} : vector<8x8xf32>, vector<8x8xf32>, vector<8x8xf32> -> vector<8x8xf32>
    %cst_17 = arith.constant 0.353553385 : f32
    %42 = vector.broadcast %cst_17 : f32 to vector<8x8xf32>
    %43 = arith.mulf %41, %42 : vector<8x8xf32>
    %44 = vector.broadcast %16 : vector<1x8xf32> to vector<8x8xf32>
    %45 = arith.addf %43, %44 : vector<8x8xf32>
    %cst_18 = arith.constant dense<0xFF800000> : vector<8xf32>
    %46 = vector.multi_reduction <maximumf>, %45, %cst_18 [1] : vector<8x8xf32> to vector<8xf32>
    %47 = vector.shape_cast %46 : vector<8xf32> to vector<8x1xf32>
    %48 = vector.broadcast %47 : vector<8x1xf32> to vector<8x8xf32>
    %49 = arith.subf %45, %48 : vector<8x8xf32>
    %50 = math.exp %49 : vector<8x8xf32>
    %cst_19 = arith.constant dense<0.000000e+00> : vector<8xf32>
    %51 = vector.multi_reduction <add>, %50, %cst_19 [1] : vector<8x8xf32> to vector<8xf32>
    %52 = vector.shape_cast %51 : vector<8xf32> to vector<8x1xf32>
    %53 = tpu.reciprocal %52 {approx = true} : vector<8x1xf32> -> vector<8x1xf32>
    %54 = vector.broadcast %53 : vector<8x1xf32> to vector<8x8xf32>
    %55 = arith.mulf %50, %54 : vector<8x8xf32>
    %cst_20 = arith.constant dense<0.000000e+00> : vector<8x8xf32>
    %56 = tpu.matmul %55, %39, %cst_20 {dimension_numbers = #tpu.dot_dimension_numbers<[1], [0], [0], [1], [0, 0, 1, 1], [], []>} : vector<8x8xf32>, vector<8x8xf32>, vector<8x8xf32> -> vector<8x8xf32>
    %57 = vector.extract_strided_slice %13 {offsets = [0, 16], sizes = [8, 8], strides = [1, 1]} : vector<8x32xf32> to vector<8x8xf32>
    %58 = vector.extract_strided_slice %14 {offsets = [0, 16], sizes = [8, 8], strides = [1, 1]} : vector<8x32xf32> to vector<8x8xf32>
    %59 = vector.extract_strided_slice %15 {offsets = [0, 16], sizes = [8, 8], strides = [1, 1]} : vector<8x32xf32> to vector<8x8xf32>
    %60 = tpu.transpose %58, [1, 0] : vector<8x8xf32> -> vector<8x8xf32>
    %cst_21 = arith.constant dense<0.000000e+00> : vector<8x8xf32>
    %61 = tpu.matmul %57, %60, %cst_21 {dimension_numbers = #tpu.dot_dimension_numbers<[1], [0], [0], [1], [0, 0, 1, 1], [], []>} : vector<8x8xf32>, vector<8x8xf32>, vector<8x8xf32> -> vector<8x8xf32>
    %cst_22 = arith.constant 0.353553385 : f32
    %62 = vector.broadcast %cst_22 : f32 to vector<8x8xf32>
    %63 = arith.mulf %61, %62 : vector<8x8xf32>
    %64 = vector.broadcast %16 : vector<1x8xf32> to vector<8x8xf32>
    %65 = arith.addf %63, %64 : vector<8x8xf32>
    %cst_23 = arith.constant dense<0xFF800000> : vector<8xf32>
    %66 = vector.multi_reduction <maximumf>, %65, %cst_23 [1] : vector<8x8xf32> to vector<8xf32>
    %67 = vector.shape_cast %66 : vector<8xf32> to vector<8x1xf32>
    %68 = vector.broadcast %67 : vector<8x1xf32> to vector<8x8xf32>
    %69 = arith.subf %65, %68 : vector<8x8xf32>
    %70 = math.exp %69 : vector<8x8xf32>
    %cst_24 = arith.constant dense<0.000000e+00> : vector<8xf32>
    %71 = vector.multi_reduction <add>, %70, %cst_24 [1] : vector<8x8xf32> to vector<8xf32>
    %72 = vector.shape_cast %71 : vector<8xf32> to vector<8x1xf32>
    %73 = tpu.reciprocal %72 {approx = true} : vector<8x1xf32> -> vector<8x1xf32>
    %74 = vector.broadcast %73 : vector<8x1xf32> to vector<8x8xf32>
    %75 = arith.mulf %70, %74 : vector<8x8xf32>
    %cst_25 = arith.constant dense<0.000000e+00> : vector<8x8xf32>
    %76 = tpu.matmul %75, %59, %cst_25 {dimension_numbers = #tpu.dot_dimension_numbers<[1], [0], [0], [1], [0, 0, 1, 1], [], []>} : vector<8x8xf32>, vector<8x8xf32>, vector<8x8xf32> -> vector<8x8xf32>
    %77 = vector.extract_strided_slice %13 {offsets = [0, 24], sizes = [8, 8], strides = [1, 1]} : vector<8x32xf32> to vector<8x8xf32>
    %78 = vector.extract_strided_slice %14 {offsets = [0, 24], sizes = [8, 8], strides = [1, 1]} : vector<8x32xf32> to vector<8x8xf32>
    %79 = vector.extract_strided_slice %15 {offsets = [0, 24], sizes = [8, 8], strides = [1, 1]} : vector<8x32xf32> to vector<8x8xf32>
    %80 = tpu.transpose %78, [1, 0] : vector<8x8xf32> -> vector<8x8xf32>
    %cst_26 = arith.constant dense<0.000000e+00> : vector<8x8xf32>
    %81 = tpu.matmul %77, %80, %cst_26 {dimension_numbers = #tpu.dot_dimension_numbers<[1], [0], [0], [1], [0, 0, 1, 1], [], []>} : vector<8x8xf32>, vector<8x8xf32>, vector<8x8xf32> -> vector<8x8xf32>
    %cst_27 = arith.constant 0.353553385 : f32
    %82 = vector.broadcast %cst_27 : f32 to vector<8x8xf32>
    %83 = arith.mulf %81, %82 : vector<8x8xf32>
    %84 = vector.broadcast %16 : vector<1x8xf32> to vector<8x8xf32>
    %85 = arith.addf %83, %84 : vector<8x8xf32>
    %cst_28 = arith.constant dense<0xFF800000> : vector<8xf32>
    %86 = vector.multi_reduction <maximumf>, %85, %cst_28 [1] : vector<8x8xf32> to vector<8xf32>
    %87 = vector.shape_cast %86 : vector<8xf32> to vector<8x1xf32>
    %88 = vector.broadcast %87 : vector<8x1xf32> to vector<8x8xf32>
    %89 = arith.subf %85, %88 : vector<8x8xf32>
    %90 = math.exp %89 : vector<8x8xf32>
    %cst_29 = arith.constant dense<0.000000e+00> : vector<8xf32>
    %91 = vector.multi_reduction <add>, %90, %cst_29 [1] : vector<8x8xf32> to vector<8xf32>
    %92 = vector.shape_cast %91 : vector<8xf32> to vector<8x1xf32>
    %93 = tpu.reciprocal %92 {approx = true} : vector<8x1xf32> -> vector<8x1xf32>
    %94 = vector.broadcast %93 : vector<8x1xf32> to vector<8x8xf32>
    %95 = arith.mulf %90, %94 : vector<8x8xf32>
    %cst_30 = arith.constant dense<0.000000e+00> : vector<8x8xf32>
    %96 = tpu.matmul %95, %79, %cst_30 {dimension_numbers = #tpu.dot_dimension_numbers<[1], [0], [0], [1], [0, 0, 1, 1], [], []>} : vector<8x8xf32>, vector<8x8xf32>, vector<8x8xf32> -> vector<8x8xf32>
    %97 = tpu.concatenate %36, %56, %76, %96 in 1 : vector<8x8xf32>, vector<8x8xf32>, vector<8x8xf32>, vector<8x8xf32> -> vector<8x32xf32>
    %98 = vector.extract_strided_slice %10 {offsets = [8, 0], sizes = [8, 32], strides = [1, 1]} : vector<16x96xf32> to vector<8x32xf32>
    %99 = vector.extract_strided_slice %10 {offsets = [8, 32], sizes = [8, 32], strides = [1, 1]} : vector<16x96xf32> to vector<8x32xf32>
    %100 = vector.extract_strided_slice %10 {offsets = [8, 64], sizes = [8, 32], strides = [1, 1]} : vector<16x96xf32> to vector<8x32xf32>
    %101 = vector.extract_strided_slice %12 {offsets = [1, 0], sizes = [1, 8], strides = [1, 1]} : vector<2x8xf32> to vector<1x8xf32>
    %102 = vector.extract_strided_slice %98 {offsets = [0, 0], sizes = [8, 8], strides = [1, 1]} : vector<8x32xf32> to vector<8x8xf32>
    %103 = vector.extract_strided_slice %99 {offsets = [0, 0], sizes = [8, 8], strides = [1, 1]} : vector<8x32xf32> to vector<8x8xf32>
    %104 = vector.extract_strided_slice %100 {offsets = [0, 0], sizes = [8, 8], strides = [1, 1]} : vector<8x32xf32> to vector<8x8xf32>
    %105 = tpu.transpose %103, [1, 0] : vector<8x8xf32> -> vector<8x8xf32>
    %cst_31 = arith.constant dense<0.000000e+00> : vector<8x8xf32>
    %106 = tpu.matmul %102, %105, %cst_31 {dimension_numbers = #tpu.dot_dimension_numbers<[1], [0], [0], [1], [0, 0, 1, 1], [], []>} : vector<8x8xf32>, vector<8x8xf32>, vector<8x8xf32> -> vector<8x8xf32>
    %cst_32 = arith.constant 0.353553385 : f32
    %107 = vector.broadcast %cst_32 : f32 to vector<8x8xf32>
    %108 = arith.mulf %106, %107 : vector<8x8xf32>
    %109 = vector.broadcast %101 : vector<1x8xf32> to vector<8x8xf32>
    %110 = arith.addf %108, %109 : vector<8x8xf32>
    %cst_33 = arith.constant dense<0xFF800000> : vector<8xf32>
    %111 = vector.multi_reduction <maximumf>, %110, %cst_33 [1] : vector<8x8xf32> to vector<8xf32>
    %112 = vector.shape_cast %111 : vector<8xf32> to vector<8x1xf32>
    %113 = vector.broadcast %112 : vector<8x1xf32> to vector<8x8xf32>
    %114 = arith.subf %110, %113 : vector<8x8xf32>
    %115 = math.exp %114 : vector<8x8xf32>
    %cst_34 = arith.constant dense<0.000000e+00> : vector<8xf32>
    %116 = vector.multi_reduction <add>, %115, %cst_34 [1] : vector<8x8xf32> to vector<8xf32>
    %117 = vector.shape_cast %116 : vector<8xf32> to vector<8x1xf32>
    %118 = tpu.reciprocal %117 {approx = true} : vector<8x1xf32> -> vector<8x1xf32>
    %119 = vector.broadcast %118 : vector<8x1xf32> to vector<8x8xf32>
    %120 = arith.mulf %115, %119 : vector<8x8xf32>
    %cst_35 = arith.constant dense<0.000000e+00> : vector<8x8xf32>
    %121 = tpu.matmul %120, %104, %cst_35 {dimension_numbers = #tpu.dot_dimension_numbers<[1], [0], [0], [1], [0, 0, 1, 1], [], []>} : vector<8x8xf32>, vector<8x8xf32>, vector<8x8xf32> -> vector<8x8xf32>
    %122 = vector.extract_strided_slice %98 {offsets = [0, 8], sizes = [8, 8], strides = [1, 1]} : vector<8x32xf32> to vector<8x8xf32>
    %123 = vector.extract_strided_slice %99 {offsets = [0, 8], sizes = [8, 8], strides = [1, 1]} : vector<8x32xf32> to vector<8x8xf32>
    %124 = vector.extract_strided_slice %100 {offsets = [0, 8], sizes = [8, 8], strides = [1, 1]} : vector<8x32xf32> to vector<8x8xf32>
    %125 = tpu.transpose %123, [1, 0] : vector<8x8xf32> -> vector<8x8xf32>
    %cst_36 = arith.constant dense<0.000000e+00> : vector<8x8xf32>
    %126 = tpu.matmul %122, %125, %cst_36 {dimension_numbers = #tpu.dot_dimension_numbers<[1], [0], [0], [1], [0, 0, 1, 1], [], []>} : vector<8x8xf32>, vector<8x8xf32>, vector<8x8xf32> -> vector<8x8xf32>
    %cst_37 = arith.constant 0.353553385 : f32
    %127 = vector.broadcast %cst_37 : f32 to vector<8x8xf32>
    %128 = arith.mulf %126, %127 : vector<8x8xf32>
    %129 = vector.broadcast %101 : vector<1x8xf32> to vector<8x8xf32>
    %130 = arith.addf %128, %129 : vector<8x8xf32>
    %cst_38 = arith.constant dense<0xFF800000> : vector<8xf32>
    %131 = vector.multi_reduction <maximumf>, %130, %cst_38 [1] : vector<8x8xf32> to vector<8xf32>
    %132 = vector.shape_cast %131 : vector<8xf32> to vector<8x1xf32>
    %133 = vector.broadcast %132 : vector<8x1xf32> to vector<8x8xf32>
    %134 = arith.subf %130, %133 : vector<8x8xf32>
    %135 = math.exp %134 : vector<8x8xf32>
    %cst_39 = arith.constant dense<0.000000e+00> : vector<8xf32>
    %136 = vector.multi_reduction <add>, %135, %cst_39 [1] : vector<8x8xf32> to vector<8xf32>
    %137 = vector.shape_cast %136 : vector<8xf32> to vector<8x1xf32>
    %138 = tpu.reciprocal %137 {approx = true} : vector<8x1xf32> -> vector<8x1xf32>
    %139 = vector.broadcast %138 : vector<8x1xf32> to vector<8x8xf32>
    %140 = arith.mulf %135, %139 : vector<8x8xf32>
    %cst_40 = arith.constant dense<0.000000e+00> : vector<8x8xf32>
    %141 = tpu.matmul %140, %124, %cst_40 {dimension_numbers = #tpu.dot_dimension_numbers<[1], [0], [0], [1], [0, 0, 1, 1], [], []>} : vector<8x8xf32>, vector<8x8xf32>, vector<8x8xf32> -> vector<8x8xf32>
    %142 = vector.extract_strided_slice %98 {offsets = [0, 16], sizes = [8, 8], strides = [1, 1]} : vector<8x32xf32> to vector<8x8xf32>
    %143 = vector.extract_strided_slice %99 {offsets = [0, 16], sizes = [8, 8], strides = [1, 1]} : vector<8x32xf32> to vector<8x8xf32>
    %144 = vector.extract_strided_slice %100 {offsets = [0, 16], sizes = [8, 8], strides = [1, 1]} : vector<8x32xf32> to vector<8x8xf32>
    %145 = tpu.transpose %143, [1, 0] : vector<8x8xf32> -> vector<8x8xf32>
    %cst_41 = arith.constant dense<0.000000e+00> : vector<8x8xf32>
    %146 = tpu.matmul %142, %145, %cst_41 {dimension_numbers = #tpu.dot_dimension_numbers<[1], [0], [0], [1], [0, 0, 1, 1], [], []>} : vector<8x8xf32>, vector<8x8xf32>, vector<8x8xf32> -> vector<8x8xf32>
    %cst_42 = arith.constant 0.353553385 : f32
    %147 = vector.broadcast %cst_42 : f32 to vector<8x8xf32>
    %148 = arith.mulf %146, %147 : vector<8x8xf32>
    %149 = vector.broadcast %101 : vector<1x8xf32> to vector<8x8xf32>
    %150 = arith.addf %148, %149 : vector<8x8xf32>
    %cst_43 = arith.constant dense<0xFF800000> : vector<8xf32>
    %151 = vector.multi_reduction <maximumf>, %150, %cst_43 [1] : vector<8x8xf32> to vector<8xf32>
    %152 = vector.shape_cast %151 : vector<8xf32> to vector<8x1xf32>
    %153 = vector.broadcast %152 : vector<8x1xf32> to vector<8x8xf32>
    %154 = arith.subf %150, %153 : vector<8x8xf32>
    %155 = math.exp %154 : vector<8x8xf32>
    %cst_44 = arith.constant dense<0.000000e+00> : vector<8xf32>
    %156 = vector.multi_reduction <add>, %155, %cst_44 [1] : vector<8x8xf32> to vector<8xf32>
    %157 = vector.shape_cast %156 : vector<8xf32> to vector<8x1xf32>
    %158 = tpu.reciprocal %157 {approx = true} : vector<8x1xf32> -> vector<8x1xf32>
    %159 = vector.broadcast %158 : vector<8x1xf32> to vector<8x8xf32>
    %160 = arith.mulf %155, %159 : vector<8x8xf32>
    %cst_45 = arith.constant dense<0.000000e+00> : vector<8x8xf32>
    %161 = tpu.matmul %160, %144, %cst_45 {dimension_numbers = #tpu.dot_dimension_numbers<[1], [0], [0], [1], [0, 0, 1, 1], [], []>} : vector<8x8xf32>, vector<8x8xf32>, vector<8x8xf32> -> vector<8x8xf32>
    %162 = vector.extract_strided_slice %98 {offsets = [0, 24], sizes = [8, 8], strides = [1, 1]} : vector<8x32xf32> to vector<8x8xf32>
    %163 = vector.extract_strided_slice %99 {offsets = [0, 24], sizes = [8, 8], strides = [1, 1]} : vector<8x32xf32> to vector<8x8xf32>
    %164 = vector.extract_strided_slice %100 {offsets = [0, 24], sizes = [8, 8], strides = [1, 1]} : vector<8x32xf32> to vector<8x8xf32>
    %165 = tpu.transpose %163, [1, 0] : vector<8x8xf32> -> vector<8x8xf32>
    %cst_46 = arith.constant dense<0.000000e+00> : vector<8x8xf32>
    %166 = tpu.matmul %162, %165, %cst_46 {dimension_numbers = #tpu.dot_dimension_numbers<[1], [0], [0], [1], [0, 0, 1, 1], [], []>} : vector<8x8xf32>, vector<8x8xf32>, vector<8x8xf32> -> vector<8x8xf32>
    %cst_47 = arith.constant 0.353553385 : f32
    %167 = vector.broadcast %cst_47 : f32 to vector<8x8xf32>
    %168 = arith.mulf %166, %167 : vector<8x8xf32>
    %169 = vector.broadcast %101 : vector<1x8xf32> to vector<8x8xf32>
    %170 = arith.addf %168, %169 : vector<8x8xf32>
    %cst_48 = arith.constant dense<0xFF800000> : vector<8xf32>
    %171 = vector.multi_reduction <maximumf>, %170, %cst_48 [1] : vector<8x8xf32> to vector<8xf32>
    %172 = vector.shape_cast %171 : vector<8xf32> to vector<8x1xf32>
    %173 = vector.broadcast %172 : vector<8x1xf32> to vector<8x8xf32>
    %174 = arith.subf %170, %173 : vector<8x8xf32>
    %175 = math.exp %174 : vector<8x8xf32>
    %cst_49 = arith.constant dense<0.000000e+00> : vector<8xf32>
    %176 = vector.multi_reduction <add>, %175, %cst_49 [1] : vector<8x8xf32> to vector<8xf32>
    %177 = vector.shape_cast %176 : vector<8xf32> to vector<8x1xf32>
    %178 = tpu.reciprocal %177 {approx = true} : vector<8x1xf32> -> vector<8x1xf32>
    %179 = vector.broadcast %178 : vector<8x1xf32> to vector<8x8xf32>
    %180 = arith.mulf %175, %179 : vector<8x8xf32>
    %cst_50 = arith.constant dense<0.000000e+00> : vector<8x8xf32>
    %181 = tpu.matmul %180, %164, %cst_50 {dimension_numbers = #tpu.dot_dimension_numbers<[1], [0], [0], [1], [0, 0, 1, 1], [], []>} : vector<8x8xf32>, vector<8x8xf32>, vector<8x8xf32> -> vector<8x8xf32>
    %182 = tpu.concatenate %121, %141, %161, %181 in 1 : vector<8x8xf32>, vector<8x8xf32>, vector<8x8xf32>, vector<8x8xf32> -> vector<8x32xf32>
    %183 = tpu.concatenate %97, %182 in 0 : vector<8x32xf32>, vector<8x32xf32> -> vector<16x32xf32>
    %c0_51 = arith.constant 0 : index
    %c0_52 = arith.constant 0 : index
    %c0_53 = arith.constant 0 : index
    %184 = vector.load %arg6[%c0_51, %c0_52, %c0_53] : memref<1x32x32xf32, #tpu.memory_space<vmem>>, vector<1x32x32xf32>
    %185 = vector.shape_cast %184 : vector<1x32x32xf32> to vector<32x32xf32>
    %cst_54 = arith.constant dense<0.000000e+00> : vector<16x32xf32>
    %186 = tpu.matmul %183, %185, %cst_54 {dimension_numbers = #tpu.dot_dimension_numbers<[1], [0], [0], [1], [0, 0, 1, 1], [], []>} : vector<16x32xf32>, vector<32x32xf32>, vector<16x32xf32> -> vector<16x32xf32>
    %c0_55 = arith.constant 0 : index
    %c0_56 = arith.constant 0 : index
    %c0_57 = arith.constant 0 : index
    %187 = vector.load %arg7[%c0_55, %c0_56, %c0_57] : memref<1x1x32xf32, #tpu.memory_space<vmem>>, vector<1x1x32xf32>
    %188 = vector.shape_cast %187 : vector<1x1x32xf32> to vector<1x32xf32>
    %189 = vector.broadcast %188 : vector<1x32xf32> to vector<16x32xf32>
    %190 = arith.addf %186, %189 : vector<16x32xf32>
    %191 = arith.addf %190, %3 : vector<16x32xf32>
    %c0_58 = arith.constant 0 : index
    %c0_59 = arith.constant 0 : index
    %c0_60 = arith.constant 0 : index
    %192 = vector.load %arg8[%c0_58, %c0_59, %c0_60] : memref<1x1x32xf32, #tpu.memory_space<vmem>>, vector<1x1x32xf32>
    %193 = vector.shape_cast %192 : vector<1x1x32xf32> to vector<1x32xf32>
    %c0_61 = arith.constant 0 : index
    %c0_62 = arith.constant 0 : index
    %c0_63 = arith.constant 0 : index
    %194 = vector.load %arg9[%c0_61, %c0_62, %c0_63] : memref<1x1x32xf32, #tpu.memory_space<vmem>>, vector<1x1x32xf32>
    %195 = vector.shape_cast %194 : vector<1x1x32xf32> to vector<1x32xf32>
    %cst_64 = arith.constant dense<0.000000e+00> : vector<16xf32>
    %196 = vector.multi_reduction <add>, %191, %cst_64 [1] : vector<16x32xf32> to vector<16xf32>
    %197 = vector.shape_cast %196 : vector<16xf32> to vector<16x1xf32>
    %cst_65 = arith.constant 3.200000e+01 : f32
    %198 = vector.broadcast %cst_65 : f32 to vector<16x1xf32>
    %199 = arith.divf %197, %198 : vector<16x1xf32>
    %200 = vector.broadcast %199 : vector<16x1xf32> to vector<16x32xf32>
    %201 = arith.subf %191, %200 : vector<16x32xf32>
    %202 = arith.mulf %201, %201 : vector<16x32xf32>
    %cst_66 = arith.constant dense<0.000000e+00> : vector<16xf32>
    %203 = vector.multi_reduction <add>, %202, %cst_66 [1] : vector<16x32xf32> to vector<16xf32>
    %204 = vector.shape_cast %203 : vector<16xf32> to vector<16x1xf32>
    %cst_67 = arith.constant 3.200000e+01 : f32
    %205 = vector.broadcast %cst_67 : f32 to vector<16x1xf32>
    %206 = arith.divf %204, %205 : vector<16x1xf32>
    %207 = vector.broadcast %199 : vector<16x1xf32> to vector<16x32xf32>
    %208 = arith.subf %191, %207 : vector<16x32xf32>
    %cst_68 = arith.constant 9.99999996E-13 : f32
    %209 = vector.broadcast %cst_68 : f32 to vector<16x1xf32>
    %210 = arith.addf %206, %209 : vector<16x1xf32>
    %211 = math.rsqrt %210 : vector<16x1xf32>
    %212 = vector.broadcast %211 : vector<16x1xf32> to vector<16x32xf32>
    %213 = arith.mulf %208, %212 : vector<16x32xf32>
    %214 = vector.broadcast %193 : vector<1x32xf32> to vector<16x32xf32>
    %215 = arith.mulf %213, %214 : vector<16x32xf32>
    %216 = vector.broadcast %195 : vector<1x32xf32> to vector<16x32xf32>
    %217 = arith.addf %215, %216 : vector<16x32xf32>
    %c0_69 = arith.constant 0 : index
    %c0_70 = arith.constant 0 : index
    %c0_71 = arith.constant 0 : index
    %218 = vector.load %arg10[%c0_69, %c0_70, %c0_71] : memref<1x32x64xf32, #tpu.memory_space<vmem>>, vector<1x32x64xf32>
    %219 = vector.shape_cast %218 : vector<1x32x64xf32> to vector<32x64xf32>
    %cst_72 = arith.constant dense<0.000000e+00> : vector<16x64xf32>
    %220 = tpu.matmul %217, %219, %cst_72 {dimension_numbers = #tpu.dot_dimension_numbers<[1], [0], [0], [1], [0, 0, 1, 1], [], []>} : vector<16x32xf32>, vector<32x64xf32>, vector<16x64xf32> -> vector<16x64xf32>
    %c0_73 = arith.constant 0 : index
    %c0_74 = arith.constant 0 : index
    %c0_75 = arith.constant 0 : index
    %221 = vector.load %arg11[%c0_73, %c0_74, %c0_75] : memref<1x1x64xf32, #tpu.memory_space<vmem>>, vector<1x1x64xf32>
    %222 = vector.shape_cast %221 : vector<1x1x64xf32> to vector<1x64xf32>
    %223 = vector.broadcast %222 : vector<1x64xf32> to vector<16x64xf32>
    %224 = arith.addf %220, %223 : vector<16x64xf32>
    %225 = arith.mulf %224, %224 : vector<16x64xf32>
    %226 = arith.mulf %224, %225 : vector<16x64xf32>
    %cst_76 = arith.constant 4.471500e-02 : f32
    %227 = vector.broadcast %cst_76 : f32 to vector<16x64xf32>
    %228 = arith.mulf %227, %226 : vector<16x64xf32>
    %229 = arith.addf %224, %228 : vector<16x64xf32>
    %cst_77 = arith.constant 0.797884583 : f32
    %230 = vector.broadcast %cst_77 : f32 to vector<16x64xf32>
    %231 = arith.mulf %230, %229 : vector<16x64xf32>
    %232 = math.tanh %231 : vector<16x64xf32>
    %cst_78 = arith.constant 1.000000e+00 : f32
    %233 = vector.broadcast %cst_78 : f32 to vector<16x64xf32>
    %234 = arith.addf %233, %232 : vector<16x64xf32>
    %cst_79 = arith.constant 5.000000e-01 : f32
    %235 = vector.broadcast %cst_79 : f32 to vector<16x64xf32>
    %236 = arith.mulf %235, %234 : vector<16x64xf32>
    %237 = arith.mulf %224, %236 : vector<16x64xf32>
    %c0_80 = arith.constant 0 : index
    %c0_81 = arith.constant 0 : index
    %c0_82 = arith.constant 0 : index
    %238 = vector.load %arg12[%c0_80, %c0_81, %c0_82] : memref<1x64x32xf32, #tpu.memory_space<vmem>>, vector<1x64x32xf32>
    %239 = vector.shape_cast %238 : vector<1x64x32xf32> to vector<64x32xf32>
    %cst_83 = arith.constant dense<0.000000e+00> : vector<16x32xf32>
    %240 = tpu.matmul %237, %239, %cst_83 {dimension_numbers = #tpu.dot_dimension_numbers<[1], [0], [0], [1], [0, 0, 1, 1], [], []>} : vector<16x64xf32>, vector<64x32xf32>, vector<16x32xf32> -> vector<16x32xf32>
    %c0_84 = arith.constant 0 : index
    %c0_85 = arith.constant 0 : index
    %c0_86 = arith.constant 0 : index
    %241 = vector.load %arg13[%c0_84, %c0_85, %c0_86] : memref<1x1x32xf32, #tpu.memory_space<vmem>>, vector<1x1x32xf32>
    %242 = vector.shape_cast %241 : vector<1x1x32xf32> to vector<1x32xf32>
    %243 = vector.broadcast %242 : vector<1x32xf32> to vector<16x32xf32>
    %244 = arith.addf %240, %243 : vector<16x32xf32>
    %245 = arith.addf %244, %217 : vector<16x32xf32>
    %c0_87 = arith.constant 0 : index
    %c0_88 = arith.constant 0 : index
    %c0_89 = arith.constant 0 : index
    %246 = vector.load %arg14[%c0_87, %c0_88, %c0_89] : memref<1x1x32xf32, #tpu.memory_space<vmem>>, vector<1x1x32xf32>
    %247 = vector.shape_cast %246 : vector<1x1x32xf32> to vector<1x32xf32>
    %c0_90 = arith.constant 0 : index
    %c0_91 = arith.constant 0 : index
    %c0_92 = arith.constant 0 : index
    %248 = vector.load %arg15[%c0_90, %c0_91, %c0_92] : memref<1x1x32xf32, #tpu.memory_space<vmem>>, vector<1x1x32xf32>
    %249 = vector.shape_cast %248 : vector<1x1x32xf32> to vector<1x32xf32>
    %cst_93 = arith.constant dense<0.000000e+00> : vector<16xf32>
    %250 = vector.multi_reduction <add>, %245, %cst_93 [1] : vector<16x32xf32> to vector<16xf32>
    %251 = vector.shape_cast %250 : vector<16xf32> to vector<16x1xf32>
    %cst_94 = arith.constant 3.200000e+01 : f32
    %252 = vector.broadcast %cst_94 : f32 to vector<16x1xf32>
    %253 = arith.divf %251, %252 : vector<16x1xf32>
    %254 = vector.broadcast %253 : vector<16x1xf32> to vector<16x32xf32>
    %255 = arith.subf %245, %254 : vector<16x32xf32>
    %256 = arith.mulf %255, %255 : vector<16x32xf32>
    %cst_95 = arith.constant dense<0.000000e+00> : vector<16xf32>
    %257 = vector.multi_reduction <add>, %256, %cst_95 [1] : vector<16x32xf32> to vector<16xf32>
    %258 = vector.shape_cast %257 : vector<16xf32> to vector<16x1xf32>
    %cst_96 = arith.constant 3.200000e+01 : f32
    %259 = vector.broadcast %cst_96 : f32 to vector<16x1xf32>
    %260 = arith.divf %258, %259 : vector<16x1xf32>
    %261 = vector.broadcast %253 : vector<16x1xf32> to vector<16x32xf32>
    %262 = arith.subf %245, %261 : vector<16x32xf32>
    %cst_97 = arith.constant 9.99999996E-13 : f32
    %263 = vector.broadcast %cst_97 : f32 to vector<16x1xf32>
    %264 = arith.addf %260, %263 : vector<16x1xf32>
    %265 = math.rsqrt %264 : vector<16x1xf32>
    %266 = vector.broadcast %265 : vector<16x1xf32> to vector<16x32xf32>
    %267 = arith.mulf %262, %266 : vector<16x32xf32>
    %268 = vector.broadcast %247 : vector<1x32xf32> to vector<16x32xf32>
    %269 = arith.mulf %267, %268 : vector<16x32xf32>
    %270 = vector.broadcast %249 : vector<1x32xf32> to vector<16x32xf32>
    %271 = arith.addf %269, %270 : vector<16x32xf32>
    %c0_98 = arith.constant 0 : index
    %c0_99 = arith.constant 0 : index
    %272 = vector.load %arg16[%c0_98, %c0_99] : memref<16x32xf32, #tpu.memory_space<vmem>>, vector<16x32xf32>
    tpu.vector_store %arg16[%c0_98, %c0_99], %271 {strides = array<i32>} : memref<16x32xf32, #tpu.memory_space<vmem>>, vector<16x32xf32>,
    return
  }
  func.func @transform_0(%arg0: i32, %arg1: i32) -> (i32, i32) {
    %c0_i32 = arith.constant 0 : i32
    %c0_i32_0 = arith.constant 0 : i32
    return %arg0, %c0_i32 : i32, i32
  }
  func.func @transform_1(%arg0: i32, %arg1: i32) -> (i32, i32, i32) {
    %c0_i32 = arith.constant 0 : i32
    %c0_i32_0 = arith.constant 0 : i32
    %c0_i32_1 = arith.constant 0 : i32
    return %arg0, %c0_i32, %c0_i32_0 : i32, i32, i32
  }
  func.func @transform_2(%arg0: i32, %arg1: i32) -> (i32, i32, i32) {
    %c0_i32 = arith.constant 0 : i32
    %c0_i32_0 = arith.constant 0 : i32
    %c0_i32_1 = arith.constant 0 : i32
    return %arg1, %c0_i32, %c0_i32_0 : i32, i32, i32
  }
  func.func @transform_3(%arg0: i32, %arg1: i32) -> (i32, i32, i32) {
    %c0_i32 = arith.constant 0 : i32
    %c0_i32_0 = arith.constant 0 : i32
    %c0_i32_1 = arith.constant 0 : i32
    return %arg1, %c0_i32, %c0_i32_0 : i32, i32, i32
  }
  func.func @transform_4(%arg0: i32, %arg1: i32) -> (i32, i32, i32) {
    %c0_i32 = arith.constant 0 : i32
    %c0_i32_0 = arith.constant 0 : i32
    %c0_i32_1 = arith.constant 0 : i32
    return %arg1, %c0_i32, %c0_i32_0 : i32, i32, i32
  }
  func.func @transform_5(%arg0: i32, %arg1: i32) -> (i32, i32, i32) {
    %c0_i32 = arith.constant 0 : i32
    %c0_i32_0 = arith.constant 0 : i32
    %c0_i32_1 = arith.constant 0 : i32
    return %arg1, %c0_i32, %c0_i32_0 : i32, i32, i32
  }
  func.func @transform_6(%arg0: i32, %arg1: i32) -> (i32, i32, i32) {
    %c0_i32 = arith.constant 0 : i32
    %c0_i32_0 = arith.constant 0 : i32
    %c0_i32_1 = arith.constant 0 : i32
    return %arg1, %c0_i32, %c0_i32_0 : i32, i32, i32
  }
  func.func @transform_7(%arg0: i32, %arg1: i32) -> (i32, i32, i32) {
    %c0_i32 = arith.constant 0 : i32
    %c0_i32_0 = arith.constant 0 : i32
    %c0_i32_1 = arith.constant 0 : i32
    return %arg1, %c0_i32, %c0_i32_0 : i32, i32, i32
  }
  func.func @transform_8(%arg0: i32, %arg1: i32) -> (i32, i32, i32) {
    %c0_i32 = arith.constant 0 : i32
    %c0_i32_0 = arith.constant 0 : i32
    %c0_i32_1 = arith.constant 0 : i32
    return %arg1, %c0_i32, %c0_i32_0 : i32, i32, i32
  }
  func.func @transform_9(%arg0: i32, %arg1: i32) -> (i32, i32, i32) {
    %c0_i32 = arith.constant 0 : i32
    %c0_i32_0 = arith.constant 0 : i32
    %c0_i32_1 = arith.constant 0 : i32
    return %arg1, %c0_i32, %c0_i32_0 : i32, i32, i32
  }
  func.func @transform_10(%arg0: i32, %arg1: i32) -> (i32, i32, i32) {
    %c0_i32 = arith.constant 0 : i32
    %c0_i32_0 = arith.constant 0 : i32
    %c0_i32_1 = arith.constant 0 : i32
    return %arg1, %c0_i32, %c0_i32_0 : i32, i32, i32
  }
  func.func @transform_11(%arg0: i32, %arg1: i32) -> (i32, i32, i32) {
    %c0_i32 = arith.constant 0 : i32
    %c0_i32_0 = arith.constant 0 : i32
    %c0_i32_1 = arith.constant 0 : i32
    return %arg1, %c0_i32, %c0_i32_0 : i32, i32, i32
  }
  func.func @transform_12(%arg0: i32, %arg1: i32) -> (i32, i32, i32) {
    %c0_i32 = arith.constant 0 : i32
    %c0_i32_0 = arith.constant 0 : i32
    %c0_i32_1 = arith.constant 0 : i32
    return %arg1, %c0_i32, %c0_i32_0 : i32, i32, i32
  }
  func.func @transform_13(%arg0: i32, %arg1: i32) -> (i32, i32, i32) {
    %c0_i32 = arith.constant 0 : i32
    %c0_i32_0 = arith.constant 0 : i32
    %c0_i32_1 = arith.constant 0 : i32
    return %arg1, %c0_i32, %c0_i32_0 : i32, i32, i32
  }
  func.func @transform_14(%arg0: i32, %arg1: i32) -> (i32, i32) {
    %c0_i32 = arith.constant 0 : i32
    %c0_i32_0 = arith.constant 0 : i32
    return %arg0, %c0_i32 : i32, i32
  }
}

module attributes {stable_mosaic.version = 11 : i64} {
  func.func @_head_kernel(%arg0: i32, %arg1: memref<32x32xf32, #tpu.memory_space<vmem>>, %arg2: memref<32x32xf32, #tpu.memory_space<vmem>>, %arg3: memref<1x32xf32, #tpu.memory_space<vmem>>, %arg4: memref<2x64xf32, #tpu.memory_space<vmem>>, %arg5: memref<64x6xf32, #tpu.memory_space<vmem>>, %arg6: memref<1x6xf32, #tpu.memory_space<vmem>>, %arg7: memref<2x6xf32, #tpu.memory_space<vmem>>) attributes {dimension_semantics = [#tpu.dimension_semantics<arbitrary>], iteration_bounds = array<i64: 1>, scalar_prefetch = 0 : i64, scratch_operands = 0 : i64, tpu.core_type = #tpu.core_type<tc>, window_params = [{pipeline_mode = #tpu.pipeline_mode<synchronous>, transform_indices = @transform_0, window_bounds = array<i64: 32, 32>}, {pipeline_mode = #tpu.pipeline_mode<synchronous>, transform_indices = @transform_1, window_bounds = array<i64: 32, 32>}, {pipeline_mode = #tpu.pipeline_mode<synchronous>, transform_indices = @transform_2, window_bounds = array<i64: 1, 32>}, {pipeline_mode = #tpu.pipeline_mode<synchronous>, transform_indices = @transform_3, window_bounds = array<i64: 2, 64>}, {pipeline_mode = #tpu.pipeline_mode<synchronous>, transform_indices = @transform_4, window_bounds = array<i64: 64, 6>}, {pipeline_mode = #tpu.pipeline_mode<synchronous>, transform_indices = @transform_5, window_bounds = array<i64: 1, 6>}, {pipeline_mode = #tpu.pipeline_mode<synchronous>, transform_indices = @transform_6, window_bounds = array<i64: 2, 6>}]} {
    %c0 = arith.constant 0 : index
    %c0_0 = arith.constant 0 : index
    %0 = vector.load %arg1[%c0, %c0_0] : memref<32x32xf32, #tpu.memory_space<vmem>>, vector<32x32xf32>
    %1 = tpu.iota {dimensions = array<i32: 0>} : vector<4x32xi32>
    %c8_i32 = arith.constant 8 : i32
    %2 = vector.broadcast %c8_i32 : i32 to vector<4x32xi32>
    %3 = arith.muli %1, %2 : vector<4x32xi32>
    %4 = tpu.iota {dimensions = array<i32: 1>} : vector<4x32xi32>
    %5 = arith.cmpi eq, %3, %4 : vector<4x32xi32>
    %6 = arith.extui %5 : vector<4x32xi1> to vector<4x32xi32>
    %7 = arith.sitofp %6 : vector<4x32xi32> to vector<4x32xf32>
    %cst = arith.constant dense<0.000000e+00> : vector<4x32xf32>
    %8 = tpu.matmul %7, %0, %cst {dimension_numbers = #tpu.dot_dimension_numbers<[1], [0], [0], [1], [0, 0, 1, 1], [], []>} : vector<4x32xf32>, vector<32x32xf32>, vector<4x32xf32> -> vector<4x32xf32>
    %c0_1 = arith.constant 0 : index
    %c0_2 = arith.constant 0 : index
    %9 = vector.load %arg2[%c0_1, %c0_2] : memref<32x32xf32, #tpu.memory_space<vmem>>, vector<32x32xf32>
    %cst_3 = arith.constant dense<0.000000e+00> : vector<4x32xf32>
    %10 = tpu.matmul %8, %9, %cst_3 {dimension_numbers = #tpu.dot_dimension_numbers<[1], [0], [0], [1], [0, 0, 1, 1], [], []>} : vector<4x32xf32>, vector<32x32xf32>, vector<4x32xf32> -> vector<4x32xf32>
    %c0_4 = arith.constant 0 : index
    %c0_5 = arith.constant 0 : index
    %11 = vector.load %arg3[%c0_4, %c0_5] : memref<1x32xf32, #tpu.memory_space<vmem>>, vector<1x32xf32>
    %12 = vector.broadcast %11 : vector<1x32xf32> to vector<4x32xf32>
    %13 = arith.addf %10, %12 : vector<4x32xf32>
    %14 = math.tanh %13 : vector<4x32xf32>
    %15 = vector.extract_strided_slice %14 {offsets = [0, 0], sizes = [2, 32], strides = [1, 1]} : vector<4x32xf32> to vector<2x32xf32>
    %16 = vector.extract_strided_slice %14 {offsets = [2, 0], sizes = [2, 32], strides = [1, 1]} : vector<4x32xf32> to vector<2x32xf32>
    %17 = tpu.concatenate %15, %16 in 1 : vector<2x32xf32>, vector<2x32xf32> -> vector<2x64xf32>
    %c0_6 = arith.constant 0 : index
    %c0_7 = arith.constant 0 : index
    %18 = vector.load %arg4[%c0_6, %c0_7] : memref<2x64xf32, #tpu.memory_space<vmem>>, vector<2x64xf32>
    %19 = arith.addf %17, %18 : vector<2x64xf32>
    %c0_8 = arith.constant 0 : index
    %c0_9 = arith.constant 0 : index
    %20 = vector.load %arg5[%c0_8, %c0_9] : memref<64x6xf32, #tpu.memory_space<vmem>>, vector<64x6xf32>
    %cst_10 = arith.constant dense<0.000000e+00> : vector<2x6xf32>
    %21 = tpu.matmul %19, %20, %cst_10 {dimension_numbers = #tpu.dot_dimension_numbers<[1], [0], [0], [1], [0, 0, 1, 1], [], []>} : vector<2x64xf32>, vector<64x6xf32>, vector<2x6xf32> -> vector<2x6xf32>
    %c0_11 = arith.constant 0 : index
    %c0_12 = arith.constant 0 : index
    %22 = vector.load %arg6[%c0_11, %c0_12] : memref<1x6xf32, #tpu.memory_space<vmem>>, vector<1x6xf32>
    %23 = vector.broadcast %22 : vector<1x6xf32> to vector<2x6xf32>
    %24 = arith.addf %21, %23 : vector<2x6xf32>
    %c0_13 = arith.constant 0 : index
    %c0_14 = arith.constant 0 : index
    %25 = vector.load %arg7[%c0_13, %c0_14] : memref<2x6xf32, #tpu.memory_space<vmem>>, vector<2x6xf32>
    tpu.vector_store %arg7[%c0_13, %c0_14], %24 {strides = array<i32>} : memref<2x6xf32, #tpu.memory_space<vmem>>, vector<2x6xf32>,
    return
  }
  func.func @transform_0(%arg0: i32) -> (i32, i32) {
    %c0_i32 = arith.constant 0 : i32
    %c0_i32_0 = arith.constant 0 : i32
    %c0_i32_1 = arith.constant 0 : i32
    return %c0_i32, %c0_i32_0 : i32, i32
  }
  func.func @transform_1(%arg0: i32) -> (i32, i32) {
    %c0_i32 = arith.constant 0 : i32
    %c0_i32_0 = arith.constant 0 : i32
    %c0_i32_1 = arith.constant 0 : i32
    return %c0_i32, %c0_i32_0 : i32, i32
  }
  func.func @transform_2(%arg0: i32) -> (i32, i32) {
    %c0_i32 = arith.constant 0 : i32
    %c0_i32_0 = arith.constant 0 : i32
    %c0_i32_1 = arith.constant 0 : i32
    return %c0_i32, %c0_i32_0 : i32, i32
  }
  func.func @transform_3(%arg0: i32) -> (i32, i32) {
    %c0_i32 = arith.constant 0 : i32
    %c0_i32_0 = arith.constant 0 : i32
    %c0_i32_1 = arith.constant 0 : i32
    return %c0_i32, %c0_i32_0 : i32, i32
  }
  func.func @transform_4(%arg0: i32) -> (i32, i32) {
    %c0_i32 = arith.constant 0 : i32
    %c0_i32_0 = arith.constant 0 : i32
    %c0_i32_1 = arith.constant 0 : i32
    return %c0_i32, %c0_i32_0 : i32, i32
  }
  func.func @transform_5(%arg0: i32) -> (i32, i32) {
    %c0_i32 = arith.constant 0 : i32
    %c0_i32_0 = arith.constant 0 : i32
    %c0_i32_1 = arith.constant 0 : i32
    return %c0_i32, %c0_i32_0 : i32, i32
  }
  func.func @transform_6(%arg0: i32) -> (i32, i32) {
    %c0_i32 = arith.constant 0 : i32
    %c0_i32_0 = arith.constant 0 : i32
    %c0_i32_1 = arith.constant 0 : i32
    return %c0_i32, %c0_i32_0 : i32, i32
  }
}

</mosaic_0001>

<bundles_post_ra>
// kernel: model_forward.3
= control target key start
LH: loop header
LB: loop body
LE: loop exit
PB: predicated region body
PF: predicated region fallthrough
CT: control target
= control target key end

     0   :  { %v402_v0 = vmov 0   ;;  %vm259_vm0 = vcmask 7168   ;;  %v403_v7 = vmov 0.0   ;;  %v29_v34 = vlaneseq  ;;  %s566_s0 = inlined_call_operand.vmem [shape: s32[32,1], index: 0, kind: input, shape index: {}]   ;;  %s567_s1 = inlined_call_operand.vmem [shape: f32[128,32], index: 1, kind: input, shape index: {}]   ;;  %s568_s7 = inlined_call_operand.vmem [shape: f32[32,1], index: 7, kind: output, shape index: {1}]   ;;  %s569_s2 = inlined_call_operand.vmem [shape: f32[32,32], index: 2, kind: input, shape index: {}]   ;;  %s570_s3 = inlined_call_operand.vmem [shape: f32[1,32], index: 3, kind: input, shape index: {}]   ;;  %s571_s4 = inlined_call_operand.vmem [shape: f32[1,32], index: 4, kind: input, shape index: {}]   ;;  %s572_s5 = inlined_call_operand.vmem [shape: f32[1,32], index: 5, kind: input, shape index: {}]   ;;  %s573_s6 = inlined_call_operand.vmem [shape: f32[32,32], index: 6, kind: output, shape index: {0}]  }
   0x1   :  { %393 = vset.pattern.permute.xlu1 %v402_v0  ;;  %392 = vset.pattern.permute.xlu0 %v402_v0  ;;  %v26_v1 = vld [vmem:[%s566_s0 + $0x8] sm:$0xff]  ;;  %v25_v2 = vld [vmem:[%s566_s0] sm:$0xff]  ;;  %v28_v3 = vld [vmem:[%s566_s0 + $0x18] sm:$0xff]  ;;  %v404_v38 = vmov 1.0   ;;  %vm173_vm9 = vcmask 261120  }
   0x2   :  { %35 = vperm.xlu1 %393, %v26_v1   ;;  %vm252_vm1 = vcmp.eq.s32.totalorder %v26_v1, 0  ;;  %32 = vperm.xlu0 %392, %v25_v2   ;;  %vm251_vm2 = vcmp.eq.s32.totalorder %v25_v2, 0  ;;  %vm254_vm3 = vcmp.eq.s32.totalorder %v28_v3, 0  ;;  %v27_v4 = vld [vmem:[%s566_s0 + $0x10] sm:$0xff]  ;;  %v55_v5 = vld [vmem:[%s567_s1] sm:$0xff]  ;;  %v56_v6 = vld [vmem:[%s567_s1 + $0x8] sm:$0xff] }
   0x3   :  { %v256_v8 = vsel %vm252_vm1, -10000.0, %v403_v7  ;;  %v255_v9 = vsel %vm251_vm2, -10000.0, %v403_v7  ;;  %v258_v10 = vsel %vm254_vm3, -10000.0, %v403_v7  ;;  %vm253_vm4 = vcmp.eq.s32.totalorder %v27_v4, 0  ;;  %v57_v11 = vld [vmem:[%s567_s1 + $0x10] sm:$0xff]  ;;  %v58_v12 = vld [vmem:[%s567_s1 + $0x18] sm:$0xff] }
   0x4   :  { %261 = vst.msk [vmem:[%s568_s7 + $0x8] sm:$0xff] %vm259_vm0, %v256_v8  ;;  %260 = vst.msk [vmem:[%s568_s7] sm:$0xff] %vm259_vm0, %v255_v9  ;;  %v257_v13 = vsel %vm253_vm4, -10000.0, %v403_v7  ;;  %v341_v14 = vpack.c.bf16 %v56_v6, %v55_v5  ;;  %v345_v15 = vpack.c.bf16 %v58_v12, %v57_v11  ;;  %v59_v16 = vld [vmem:[%s567_s1 + $0x20] sm:$0xff]  ;;  %v60_v17 = vld [vmem:[%s567_s1 + $0x28] sm:$0xff]  ;;  %v30_v35 = vand.u32 127, %v29_v34 }
   0x5   :  { %263 = vst.msk [vmem:[%s568_s7 + $0x18] sm:$0xff] %vm259_vm0, %v258_v10  ;;  %262 = vst.msk [vmem:[%s568_s7 + $0x10] sm:$0xff] %vm259_vm0, %v257_v13  ;;  %v349_v18 = vpack.c.bf16 %v60_v17, %v59_v16  ;;  %v61_v19 = vld [vmem:[%s567_s1 + $0x30] sm:$0xff]  ;;  %v62_v20 = vld [vmem:[%s567_s1 + $0x38] sm:$0xff] }
   0x6   :  { %41 = vperm.xlu1 %393, %v28_v3   ;;  %38 = vperm.xlu0 %392, %v27_v4   ;;  %v353_v21 = vpack.c.bf16 %v62_v20, %v61_v19  ;;  %v63_v22 = vld [vmem:[%s567_s1 + $0x40] sm:$0xff]  ;;  %v64_v23 = vld [vmem:[%s567_s1 + $0x48] sm:$0xff]  ;;  %v65_v25 = vld [vmem:[%s567_s1 + $0x50] sm:$0xff] }
   0x7   :  { %342 = vmatprep.subr.bf16.mxu0 %v341_v14  ;;  %373 = vmatprep.subr.bf16.mxu1 %v341_v14  ;;  %v357_v24 = vpack.c.bf16 %v64_v23, %v63_v22  ;;  %v66_v26 = vld [vmem:[%s567_s1 + $0x58] sm:$0xff]  ;;  %v67_v28 = vld [vmem:[%s567_s1 + $0x60] sm:$0xff]  ;;  %v68_v29 = vld [vmem:[%s567_s1 + $0x68] sm:$0xff] }
   0x8   :  { %344 = vmatpush3.bf16.msra.mxu0 %v341_v14  ;;  %381 = vmatpush3.bf16.msra.mxu1 %v341_v14  ;;  %v361_v27 = vpack.c.bf16 %v66_v26, %v65_v25  ;;  %v365_v30 = vpack.c.bf16 %v68_v29, %v67_v28  ;;  %v69_v31 = vld [vmem:[%s567_s1 + $0x70] sm:$0xff]  ;;  %v70_v32 = vld [vmem:[%s567_s1 + $0x78] sm:$0xff]  ;;  %v72_v41 = vld [vmem:[%s569_s2 + $0x8] sm:$0xff] }
   0x9   :  { %346 = vmatprep.subr.bf16.mxu0 %v345_v15  ;;  %374 = vmatprep.subr.bf16.mxu1 %v345_v15  ;;  %v369_v33 = vpack.c.bf16 %v70_v32, %v69_v31  ;;  %v71_v42 = vld [vmem:[%s569_s2] sm:$0xff]  ;;  %v74_v48 = vld [vmem:[%s569_s2 + $0x18] sm:$0xff]  ;;  %v73_v49 = vld [vmem:[%s569_s2 + $0x10] sm:$0xff] }
   0xa   :  { %v280_v44 = vld [vmem:[%s570_s3] ss:$0 sm:$0xff] }
   0xb   :  { %v281_v31 = vld [vmem:[%s571_s4] ss:$0 sm:$0xff] }
   0xc   :  { %348 = vmatpush3.bf16.msra.mxu0 %v345_v15  ;;  %382 = vmatpush3.bf16.msra.mxu1 %v345_v15  ;;  %v282_v34 = vld [vmem:[%s572_s5] ss:$0 sm:$0xff] }
   0xd   :  { %350 = vmatprep.subr.bf16.mxu0 %v349_v18  ;;  %375 = vmatprep.subr.bf16.mxu1 %v349_v18 }
  0x10   :  { %352 = vmatpush3.bf16.msra.mxu0 %v349_v18  ;;  %383 = vmatpush3.bf16.msra.mxu1 %v349_v18 }
  0x11   :  { %354 = vmatprep.subr.bf16.mxu0 %v353_v21  ;;  %376 = vmatprep.subr.bf16.mxu1 %v353_v21 }
  0x14   :  { %356 = vmatpush3.bf16.msra.mxu0 %v353_v21  ;;  %384 = vmatpush3.bf16.msra.mxu1 %v353_v21 }
  0x15   :  { %358 = vmatprep.subr.bf16.mxu0 %v357_v24  ;;  %377 = vmatprep.subr.bf16.mxu1 %v357_v24 }
  0x18   :  { %360 = vmatpush3.bf16.msra.mxu0 %v357_v24  ;;  %385 = vmatpush3.bf16.msra.mxu1 %v357_v24 }
  0x19   :  { %362 = vmatprep.subr.bf16.mxu0 %v361_v27  ;;  %378 = vmatprep.subr.bf16.mxu1 %v361_v27 }
  0x1c   :  { %364 = vmatpush3.bf16.msra.mxu0 %v361_v27  ;;  %386 = vmatpush3.bf16.msra.mxu1 %v361_v27 }
  0x1d   :  { %366 = vmatprep.subr.bf16.mxu0 %v365_v30  ;;  %379 = vmatprep.subr.bf16.mxu1 %v365_v30 }
  0x20   :  { %368 = vmatpush3.bf16.msra.mxu0 %v365_v30  ;;  %387 = vmatpush3.bf16.msra.mxu1 %v365_v30 }
  0x21   :  { %370 = vmatprep.subr.bf16.mxu0 %v369_v33  ;;  %380 = vmatprep.subr.bf16.mxu1 %v369_v33 }
  0x24   :  { %372 = vmatpush3.bf16.msra.mxu0 %v369_v33  ;;  %388 = vmatpush3.bf16.msra.mxu1 %v369_v33 }
  0x81   :  { %v36_v36 = vpop.permute.xlu1 %35  ;;  %v33_v37 = vpop.permute.xlu0 %32 }
  0x82   :  { %vm44_vm5 = vcmp.eq.s32.totalorder %v30_v35, %v36_v36  ;;  %vm43_vm6 = vcmp.eq.s32.totalorder %v30_v35, %v33_v37 }
  0x83   :  { %335 = vmatprep.mubr.msk.f32.mxu0 %vm43_vm6, %v404_v38 }
  0x84   :  { %336 = vmatmul.mubr.msk.f32.vlgmr.msra.gmra.mrb[0].mxu0 %vm44_vm5, %v404_v38 }
  0x85   :  { %v42_v39 = vpop.permute.xlu1 %41  ;;  %v39_v40 = vpop.permute.xlu0 %38 }
  0x86   :  { %vm46_vm7 = vcmp.eq.s32.totalorder %v30_v35, %v42_v39  ;;  %vm45_vm8 = vcmp.eq.s32.totalorder %v30_v35, %v39_v40 }
  0x87   :  { %338 = vmatprep.mubr.msk.f32.mxu1 %vm45_vm8, %v404_v38 }
  0x88   :  { %339 = vmatmul.mubr.msk.f32.vlgmr.msra.gmra.mrb[0].mxu1 %vm46_vm7, %v404_v38 }
 0x157   :  { %v337_v43 = vpop.f32.mrb[0].mxu0 }
 0x158   :  { %v147_v45 = vadd.f32 %v337_v43, %v72_v41  ;;  %v141_v46 = vpop.f32.mrb[1].mxu0 }
 0x159   :  { %v142_v47 = vadd.f32 %v141_v46, %v71_v42 }
 0x15a   :  { %v168_v50 = vadd.f32 %v280_v44, %v147_v45 }
 0x15b   :  { %v340_v51 = vpop.f32.mrb[0].mxu1  ;;  %v167_v52 = vadd.f32 %v280_v44, %v142_v47 }
 0x15c   :  { %v151_v53 = vpop.f32.mrb[1].mxu1  ;;  %v177_v54 = vsel %vm173_vm9, %v168_v50, 0.0  ;;  %v157_v55 = vadd.f32 %v340_v51, %v74_v48 }
 0x15d   :  { %v152_v56 = vadd.f32 %v151_v53, %v73_v49  ;;  %178 = vadd.xlane.f32.xlu1 %v177_v54  ;;  %v174_v57 = vsel %vm173_vm9, %v167_v52, 0.0 }
 0x15e   :  { %175 = vadd.xlane.f32.xlu0 %v174_v57  ;;  %v170_v60 = vadd.f32 %v280_v44, %v157_v55 }
 0x15f   :  { %v169_v58 = vadd.f32 %v280_v44, %v152_v56 }
 0x160   :  { %v183_v61 = vsel %vm173_vm9, %v170_v60, 0.0 }
 0x161   :  { %v180_v59 = vsel %vm173_vm9, %v169_v58, 0.0 }
 0x162   :  { %181 = vadd.xlane.f32.xlu0 %v180_v59 }
 0x166   :  { %184 = vadd.xlane.f32.xlu0 %v183_v61 }
 0x1ea   :  { %v179_v62 = vpop.xlane.xlu1 %178 }
 0x1eb   :  { %v188_v63 = vmul.f32 0.03125, %v179_v62  ;;  %v176_v0 = vpop.xlane.xlu0 %175 }
 0x1ec   :  { %v187_v1 = vmul.f32 0.03125, %v176_v0 }
 0x1ed   :  { %v192_v2 = vsub.f32 %v168_v50, %v188_v63 }
 0x1ee   :  { %v191_v3 = vsub.f32 %v167_v52, %v187_v1 }
 0x1ef   :  { %v182_v4 = vpop.xlane.xlu0 %181  ;;  %v196_v5 = vmul.f32 %v192_v2, %v192_v2 }
 0x1f0   :  { %v189_v6 = vmul.f32 0.03125, %v182_v4  ;;  %v195_v7 = vmul.f32 %v191_v3, %v191_v3 }
 0x1f1   :  { %v202_v8 = vsel %vm173_vm9, %v196_v5, 0.0 }
 0x1f2   :  { %v193_v9 = vsub.f32 %v169_v58, %v189_v6  ;;  %203 = vadd.xlane.f32.xlu0 %v202_v8  ;;  %v199_v10 = vsel %vm173_vm9, %v195_v7, 0.0 }
 0x1f3   :  { %200 = vadd.xlane.f32.xlu1 %v199_v10  ;;  %v185_v11 = vpop.xlane.xlu0 %184 }
 0x1f4   :  { %v190_v12 = vmul.f32 0.03125, %v185_v11  ;;  %v197_v13 = vmul.f32 %v193_v9, %v193_v9 }
 0x1f6   :  { %v194_v14 = vsub.f32 %v170_v60, %v190_v12  ;;  %v205_v15 = vsel %vm173_vm9, %v197_v13, 0.0 }
 0x1f7   :  { %206 = vadd.xlane.f32.xlu1 %v205_v15 }
 0x1f8   :  { %v198_v16 = vmul.f32 %v194_v14, %v194_v14 }
 0x1fa   :  { %v208_v17 = vsel %vm173_vm9, %v198_v16, 0.0 }
 0x1fb   :  { %209 = vadd.xlane.f32.xlu0 %v208_v17 }
 0x27f   :  { %v204_v18 = vpop.xlane.xlu0 %203 }
 0x280   :  { %v212_v19 = vmul.f32 0.03125, %v204_v18  ;;  %v201_v20 = vpop.xlane.xlu1 %200 }
 0x281   :  { %v211_v21 = vmul.f32 0.03125, %v201_v20 }
 0x282   :  { %v216_v22 = vadd.f32 1e-12, %v212_v19 }
 0x283   :  { %v215_v23 = vadd.f32 1e-12, %v211_v21 }
 0x284   :  { %394 = vrsqrt.f32 %v216_v22  ;;  %v207_v24 = vpop.xlane.xlu1 %206 }
 0x285   :  { %396 = vrsqrt.f32 %v215_v23  ;;  %v213_v25 = vmul.f32 0.03125, %v207_v24 }
 0x287   :  { %v217_v26 = vadd.f32 1e-12, %v213_v25 }
 0x288   :  { %v210_v27 = vpop.xlane.xlu0 %209 }
 0x289   :  { %398 = vrsqrt.f32 %v217_v26  ;;  %v214_v28 = vmul.f32 0.03125, %v210_v27 }
 0x28b   :  { %v218_v29 = vadd.f32 1e-12, %v214_v28 }
 0x28d   :  { %400 = vrsqrt.f32 %v218_v29 }
 0x28e   :  { %v395_v30 = vpop.eup %394 }
 0x28f   :  { %v397_v32 = vpop.eup %396  ;;  %v224_v33 = vmul.f32 %v395_v30, %v192_v2 }
 0x290   :  { %v223_v35 = vmul.f32 %v397_v32, %v191_v3 }
 0x291   :  { %v234_v36 = vmul.f32 %v281_v31, %v224_v33 }
 0x292   :  { %v233_v37 = vmul.f32 %v281_v31, %v223_v35 }
 0x293   :  { %v399_v38 = vpop.eup %398  ;;  %v244_v39 = vadd.f32 %v282_v34, %v234_v36 }
 0x294   :  { %v243_v40 = vadd.f32 %v282_v34, %v233_v37  ;;  %v225_v41 = vmul.f32 %v399_v38, %v193_v9 }
 0x295   :  { %248 = vst.msk [vmem:[%s573_s6 + $0x8] sm:$0xff] %vm173_vm9, %v244_v39 }
 0x296   :  { %247 = vst.msk [vmem:[%s573_s6] sm:$0xff] %vm173_vm9, %v243_v40  ;;  %v235_v42 = vmul.f32 %v281_v31, %v225_v41 }
 0x297   :  { %v401_v43 = vpop.eup %400 }
 0x298   :  { %v245_v44 = vadd.f32 %v282_v34, %v235_v42  ;;  %v226_v45 = vmul.f32 %v401_v43, %v194_v14 }
 0x29a   :  { %249 = vst.msk [vmem:[%s573_s6 + $0x10] sm:$0xff] %vm173_vm9, %v245_v44  ;;  %v236_v46 = vmul.f32 %v281_v31, %v226_v45 }
 0x29c   :  { %v246_v47 = vadd.f32 %v282_v34, %v236_v46 }
 0x29e   :  { %250 = vst.msk [vmem:[%s573_s6 + $0x18] sm:$0xff] %vm173_vm9, %v246_v47 }

// kernel: model_forward.5
= control target key start
LH: loop header
LB: loop body
LE: loop exit
PB: predicated region body
PF: predicated region fallthrough
CT: control target
= control target key end

     0   :  { %v28_v3 = vlaneseq  ;;  %v429_v4 = vmov 0.0|0.0   ;;  %vm430_vm0 = vmmov 0   ;;  %v431_v7 = vmov 0.0   ;;  %s544_s0 = inlined_call_operand.vmem [shape: f32[32,32], index: 0, kind: input, shape index: {}]   ;;  %s545_s1 = inlined_call_operand.vmem [shape: f32[32,32], index: 1, kind: input, shape index: {}]   ;;  %s546_s2 = inlined_call_operand.vmem [shape: f32[1,32], index: 2, kind: input, shape index: {}]   ;;  %s547_s3 = inlined_call_operand.vmem [shape: f32[2,64], index: 3, kind: input, shape index: {}]   ;;  %s548_s4 = inlined_call_operand.vmem [shape: f32[64,6], index: 4, kind: input, shape index: {}]   ;;  %s549_s5 = inlined_call_operand.vmem [shape: f32[1,6], index: 5, kind: input, shape index: {}]   ;;  %s550_s6 = inlined_call_operand.hbm [shape: f32[2,6], index: 6, kind: output, shape index: {}]  }
   0x1   :  { %v24_v0 = vld [vmem:[%s544_s0] sm:$0xff]  ;;  %v25_v1 = vld [vmem:[%s544_s0 + $0x8] sm:$0xff]  ;;  %v26_v2 = vld [vmem:[%s544_s0 + $0x10] sm:$0xff]  ;;  %374 = vmatprep.subr.bf16.mxu1 %v429_v4  ;;  %341 = vmatprep.mubr.msk.f32.mxu1 %vm430_vm0, %v431_v7 }
   0x2   :  { %v375_v5 = vpack.c.bf16 %v25_v1, %v24_v0  ;;  %v27_v6 = vld [vmem:[%s544_s0 + $0x18] sm:$0xff]  ;;  %v29_v8 = vshrl.u32 %v28_v3, 7  ;;  %v32_v9 = vand.u32 127, %v28_v3  ;;  %386 = vmatprep.subr.bf16.mxu0 %v429_v4  ;;  %371 = vmatprep.mubr.msk.f32.mxu0 %vm430_vm0, %v431_v7 }
   0x3   :  { %11 = vsyncpa [#allocation3], 0  ;;  %v378_v10 = vpack.c.bf16 %v27_v6, %v26_v2  ;;  %v110_v12 = vld [vmem:[%s545_s1] sm:$0xff]  ;;  %v111_v13 = vld [vmem:[%s545_s1 + $0x8] sm:$0xff]  ;;  %vm36_vm2 = vcmask 261120   ;;  %s432_s29 = smov 32  }
   0x4   :  { %376 = vmatpush3.bf16.msra.mxu1 %v375_v5  ;;  %v30_v11 = vmul.u32 8, %v29_v8  ;;  %v381_v15 = vpack.c.bf16 %v111_v13, %v110_v12  ;;  %v112_v16 = vld [vmem:[%s545_s1 + $0x10] sm:$0xff]  ;;  %v113_v17 = vld [vmem:[%s545_s1 + $0x18] sm:$0xff]  ;;  %v203_v21 = vld [vmem:[%s548_s4] sm:$0xff]  ;;  %vm218_vm3 = vcmask 523264   ;;  %s433_s0 = smov [#allocation2]  }
   0x5   :  { %377 = vmatprep.subr.bf16.mxu1 %v429_v4  ;;  %v384_v18 = vpack.c.bf16 %v113_v17, %v112_v16  ;;  %v204_v22 = vld [vmem:[%s548_s4 + $0x8] sm:$0xff]  ;;  %v205_v23 = vld [vmem:[%s548_s4 + $0x10] sm:$0xff]  ;;  %v206_v25 = vld [vmem:[%s548_s4 + $0x18] sm:$0xff]  ;;  %s300_s8 = sshll.u32 %s433_s0, 4  ;;  %vm292_vm4 = vcmask 41984   ;;  %s301_s8 = int_to_ptr.vmem [resolvable:$true] %s300_s8 }
   0x6   :  { %vm33_vm1 = vcmp.eq.s32.totalorder %v30_v11, %v32_v9  ;;  %v387_v24 = vpack.c.bf16 %v204_v22, %v203_v21  ;;  %v390_v26 = vpack.c.bf16 %v206_v25, %v205_v23  ;;  %v207_v27 = vld [vmem:[%s548_s4 + $0x20] sm:$0xff]  ;;  %v208_v28 = vld [vmem:[%s548_s4 + $0x28] sm:$0xff]  ;;  %v209_v32 = vld [vmem:[%s548_s4 + $0x30] sm:$0xff]  ;;  %s405_s9 = scalar_lea.vmem %s301_s8, 32  ;;  %p410_p1 = scmp.lt.s32.totalorder %s301_s8, %s301_s8 }
   0x7   :  { %v308_v14 = vsel %vm33_vm1, 1.0, %v431_v7  ;;  %v393_v29 = vpack.c.bf16 %v208_v28, %v207_v27  ;;  %v310_v30 = vld [vmem:[%s546_s2] ss:$0 sm:$0xff]  ;;  %v210_v33 = vld [vmem:[%s548_s4 + $0x38] sm:$0xff]  ;;  %p406_p0 = scmp.ne.s32.totalorder %s301_s8, %s405_s9  ;;  %p411_p2 = scmp.lt.s32.totalorder %s405_s9, %s405_s9 }
   0x8   :  { %379 = vmatpush3.bf16.msra.mxu1 %v378_v10  ;;  %388 = vmatpush3.bf16.msra.mxu0 %v387_v24  ;;  %v396_v36 = vpack.c.bf16 %v210_v33, %v209_v32  ;;  %v201_v39 = vld [vmem:[%s547_s3] sm:$0x3] }
   0x9   :  { %380 = vmatprep.subr.bf16.mxu1 %v429_v4  ;;  %389 = vmatprep.subr.bf16.mxu0 %v429_v4  ;;  %v312_v43 = vld [vmem:[%s549_s5] ss:$0 sm:$0xff]  ;;  %p412_p3 = por %p411_p2, %p410_p1 }
   0xb   :  { %342 = vmatmul.mubr.msk.f32.vlgmr.msra.gmra.mrb[0].mxu1 %vm36_vm2, %v308_v14  ;;  %p413_p4 = pnand %p412_p3, %p406_p0 }
   0xc   :  { %382 = vmatpush3.bf16.msra.mxu1 %v381_v15  ;;  %352 = vmatprep.mubr.msk.f32.mxu1 %vm430_vm0, %v431_v7 }
   0xd   :  { %383 = vmatprep.subr.bf16.mxu1 %v429_v4  ;;  %391 = vmatpush3.bf16.msra.mxu0 %v390_v26 }
   0xe   :  { %392 = vmatprep.subr.bf16.mxu0 %v429_v4 }
  0x10   :  { %385 = vmatpush3.bf16.msra.mxu1 %v384_v18 }
  0x11   :  { %394 = vmatpush3.bf16.msra.mxu0 %v393_v29 }
  0x12   :  { %395 = vmatprep.subr.bf16.mxu0 %v429_v4 }
  0x15   :  { %397 = vmatpush3.bf16.msra.mxu0 %v396_v36 }
  0xde   :  { %v106_v19 = vpop.f32.mrb[0].mxu1 }
  0xdf   :  { %v343_v20 = vpop.f32.mrb[1].mxu1  ;;  %353 = vmatmul.mubr.msk.f32.vlgmr.msra.gmra.mrb[2].mxu1 %vm36_vm2, %v106_v19 }
 0x1b2   :  { %v190_v31 = vpop.f32.mrb[2].mxu1 }
 0x1b3   :  { %v191_v34 = vadd.f32 %v310_v30, %v190_v31  ;;  %v354_v35 = vpop.f32.mrb[3].mxu1 }
 0x1b5   :  { %403 = vtanh.f32 %v191_v34 }
 0x1bf   :  { %v404_v37 = vpop.eup %403 }
 0x1c0   :  { %v196_v38 = vrot.slane %v404_v37, 2 }
 0x1c2   :  { %197 = vrot.lane.b32.xlu0 %v196_v38, %s432_s29 }
 0x234   :  { %v198_v40 = vpop.permute.xlu0 %197 }
 0x235   :  { %v200_v41 = vsel %vm36_vm2, %v404_v37, %v198_v40 }
 0x236   :  { %v202_v42 = vadd.f32 %v201_v39, %v200_v41 }
 0x238   :  { %372 = vmatmul.mubr.msk.f32.vlgmr.msra.gmra.mrb[0].mxu0 %vm218_vm3, %v202_v42 }
 0x30b   :  { %v288_v44 = vpop.f32.mrb[0].mxu0 }
 0x30c   :  { %v289_v45 = vadd.f32 %v312_v43, %v288_v44  ;;  %v373_v46 = vpop.f32.mrb[1].mxu0 }
 0x30e   :  { %293 = vst.msk [vmem:[#allocation2] sm:$0x3] %vm292_vm4, %v289_v45 }
 0x30f   :  { %416 = shalt.err (!%p413_p4)
}
 0x310   :  { %s417_s11 = scalar_lea.hbm %s550_s6, 32 }
 0x311   :  { %p418_p5 = scmp.ne.s32.totalorder %s550_s6, %s417_s11  ;;  %p421_p6 = scmp.lt.u32.totalorder %s417_s11, %s550_s6 }
 0x313   :  { %p423_p7 = pnand %p421_p6, %p418_p5 }
 0x315   :  { %426 = shalt.err (!%p423_p7)
}
 0x316   :  { %303 = dma.vmem_to_hbm [thread:$0]  %s301_s8, 32, %s550_s6, [#allocation3]  }
 0x317   :  { %427 = dma.done.wait [#allocation3], 32  }
 0x318   :  { %428 = vsyncadd [#allocation3], 4294967264 }
 0x319   :  { %307 = vsyncpa [#allocation3], 1 }

// kernel: model_forward.4
= control target key start
LH: loop header
LB: loop body
LE: loop exit
PB: predicated region body
PF: predicated region fallthrough
CT: control target
= control target key end

     0   :  { %s3294_s29 = smov 0   ;;  %s3296_s30 = smov 0   ;;  %s3643_s0 = inlined_call_operand.vmem [shape: f32[32,32], index: 0, kind: input, shape index: {}]   ;;  %s3644_s1 = inlined_call_operand.vmem [shape: f32[2,2,8], index: 1, kind: input, shape index: {}]   ;;  %s3645_s2 = inlined_call_operand.vmem [shape: f32[2,32,96], index: 2, kind: input, shape index: {}]   ;;  %s3646_s3 = inlined_call_operand.vmem [shape: f32[2,1,96], index: 3, kind: input, shape index: {}]   ;;  %s3647_s4 = inlined_call_operand.vmem [shape: f32[2,32,32], index: 4, kind: input, shape index: {}]   ;;  %s3648_s5 = inlined_call_operand.vmem [shape: f32[2,1,32], index: 5, kind: input, shape index: {}]   ;;  %s3649_s6 = inlined_call_operand.vmem [shape: f32[2,1,32], index: 6, kind: input, shape index: {}]   ;;  %s3650_s7 = inlined_call_operand.vmem [shape: f32[2,1,32], index: 7, kind: input, shape index: {}]   ;;  %s3651_s8 = inlined_call_operand.vmem [shape: f32[2,32,64], index: 8, kind: input, shape index: {}]   ;;  %s3652_s9 = inlined_call_operand.vmem [shape: f32[2,1,64], index: 9, kind: input, shape index: {}]   ;;  %s3653_s10 = inlined_call_operand.vmem [shape: f32[2,64,32], index: 10, kind: input, shape index: {}]   ;;  %s3654_s11 = inlined_call_operand.vmem [shape: f32[2,1,32], index: 11, kind: input, shape index: {}]   ;;  %s3655_s12 = inlined_call_operand.vmem [shape: f32[2,1,32], index: 12, kind: input, shape index: {}]   ;;  %s3656_s13 = inlined_call_operand.vmem [shape: f32[2,1,32], index: 13, kind: input, shape index: {}]   ;;  %s3657_s14 = inlined_call_operand.vmem [shape: f32[32,32], index: 14, kind: output, shape index: {}]  }
   0x1   :  { %3664 = sst [smem:[#allocation10_spill]] %s3643_s0  ;;  %s3298_s15 = smov 0  }
   0x2   :  { %3665 = sst [smem:[#allocation11_spill]] %s3644_s1  ;;  %s3300_s16 = smov 0  }
   0x3   :  { %3666 = sst [smem:[#allocation12_spill]] %s3645_s2  ;;  %s3302_s17 = smov 0  }
   0x4   :  { %3667 = sst [smem:[#allocation13_spill]] %s3647_s4 }
   0x5   :  { %3668 = sst [smem:[#allocation14_spill]] %s3657_s14 }
   0x6 LB: > { %3669 = sst [smem:[#allocation2_spill]] %s3185_s29  ;;  %s33_s18 = sadd.s32 1, %s3193_s15  ;;  %s3201_s17 = sphi %s3302_s17, %s24_s17   ;;  %s3197_s16 = sphi %s3300_s16, %s3694_s16   ;;  %s3193_s15 = sphi %s3298_s15, %s3693_s15   ;;  %s3189_s30 = sphi %s3296_s30, %s3692_s30   ;;  %s3185_s29 = sphi %s3294_s29, %s3691_s29  }
   0x7   : > { %3670 = sst [smem:[#allocation3_spill]] %s3193_s15  ;;  %s36_s19 = sadd.s32 1, %s3197_s16 }
   0x8   : > { %3671 = sst [smem:[#allocation4_spill]] %s3197_s16  ;;  %p34_p0 = scmp.ge.s32.totalorder %s33_s18, 2 }
   0x9   : > { %3672 = sst [smem:[#allocation5_spill]] %s3201_s17  ;;  %p2770_p1 = scmp.ge.s32.totalorder %s3201_s17, 1 }
   0xa   : > { %p538_p2 = scmp.lt.s32.totalorder %s3201_s17, 5  ;;  %s3696_s18 = smov (%p34_p0, %s33_s18), 0 }
   0xb   : > { %3673 = sst [smem:[#allocation6_spill]] %s3696_s18  ;;  %s3698_s19 = smov (!%p34_p0, %s36_s19), %s3197_s16 }
   0xc   : > { %p539_p3 = pnand %p2770_p1, %p538_p2  ;;  %p38_p4 = scmp.ge.s32.totalorder %s3698_s19, 2 }
   0xe   : > { %s3700_s19 = smov (%p38_p4, %s3698_s19), 0  ;;  %542 = sbr.rel (%p539_p3) target bundleno = 2628 (0xa44), region = 76 }
   0xf   : > { %3674 = sst [smem:[#allocation7_spill]] %s3700_s19 }
  0x15   : > { %s2771_s20 = sshll.u32 %s3189_s30, 1  ;;  %p638_p5 = scmp.lt.s32.totalorder %s3189_s30, 1 }
  0x16   : > { %p633_p6 = scmp.lt.s32.totalorder %s2771_s20, 3  ;;  %p642_p7 = scmp.lt.s32.totalorder %s3185_s29, 1 }
  0x17   : > { %s3702_s30 = smov (!%p638_p5, %s3189_s30), 1  ;;  %s3675_s1 = sld [smem:[#allocation11_spill]] }
  0x18   : > { %s3704_s20 = smov (!%p633_p6, %s2771_s20), 3  ;;  %s2773_s21 = sshll.u32 %s3702_s30, 1 }
  0x19   : > { %s2772_s22 = sshll.u32 %s3704_s20, 3  ;;  %s3677_s0 = sld [smem:[#allocation10_spill]] }
  0x1a   : > { %s3678_s14 = sld [smem:[#allocation14_spill]]  ;;  %s3680_s2 = sld [smem:[#allocation12_spill]] }
  0x1b   : > { %s3341_s15 = scalar_select %p642_p7, %s3185_s29, 1 }
  0x1c   : > { %s3681_s4 = sld [smem:[#allocation13_spill]]  ;;  %s3682_s24 = sld [smem:[#allocation2_spill]] }
  0x1d   : > { %s3330_s25 = scalar_lea.vmem %s3675_s1, %s2773_s21  ;;  %s2827_s30 = sshll.u32 %s3341_s15, 5 }
  0x1e   : > { %3676 = sst [smem:[#allocation8_spill]] %s3330_s25  ;;  %s3371_s19 = scalar_lea.vmem %s3651_s8, %s2827_s30 }
  0x1f   : > { %s636_s28 = scalar_lea.vmem %s3677_s0, %s2772_s22  ;;  %s679_s29 = scalar_lea.vmem %s3654_s11, %s3341_s15 }
  0x20   : > { %s3338_s16 = scalar_lea.vmem %s3678_s14, %s2772_s22  ;;  %s646_s22 = scalar_lea.vmem %s3680_s2, %s2827_s30 }
  0x21   : > { %3679 = sst [smem:[#allocation9_spill]] %s3338_s16  ;;  %s671_s2 = scalar_lea.vmem %s3652_s9, %s3341_s15 }
  0x22   : > { %s3354_s27 = scalar_lea.vmem %s3681_s4, %s2827_s30  ;;  %s2830_s4 = sshll.u32 %s3341_s15, 6 }
  0x23   : > { %s3381_s14 = scalar_lea.vmem %s3653_s10, %s2830_s4  ;;  %s682_s23 = scalar_lea.vmem %s3655_s12, %s3341_s15 }
  0x24   : > { %s685_s16 = scalar_lea.vmem %s3656_s13, %s3341_s15  ;;  %p2784_p8 = scmp.ne.s32.totalorder %s3682_s24, 0 }
  0x25   : > { %v696_v0 = vld [vmem:[%s636_s28] sm:$0xff] (!%p2784_p8)  ;;  %s3683_s26 = sld [smem:[#allocation9_spill]] (!%p2784_p8)  ;;  %vm698_vm0 = vcmask (!%p2784_p8), 261120   ;;  %v697_v1 = vld [vmem:[%s636_s28 + $0x8] sm:$0xff] (!%p2784_p8) }
  0x26   : > { %695 = sbr.rel (%p2784_p8) target bundleno = 45 (0x2d), region = 80 }
  0x2b   : > { %699 = vst.msk [vmem:[%s3683_s26] sm:$0xff] (!%p2784_p8), %vm698_vm0, %v696_v0  ;;  %700 = vst.msk [vmem:[%s3683_s26 + $0x8] sm:$0xff] (!%p2784_p8), %vm698_vm0, %v697_v1 }
  0x2d PF: > { %v703_v2 = vld [vmem:[%s646_s22] sm:$0xff]  ;;  %s3684_s4 = sld [smem:[#allocation9_spill]]  ;;  %v704_v3 = vld [vmem:[%s646_s22 + $0x8] sm:$0xff]  ;;  %v705_v4 = vld [vmem:[%s646_s22 + $0x10] sm:$0xff]  ;;  %vm714_vm1 = vcmask 261120   ;;  %v3203_v10 = vmov 0.0   ;;  %s3685_s21 = scalar_lea.vmem %s3646_s3, %s3341_s15  ;;  %v876_v31 = vlaneseq }
  0x2e   : > { %v3023_v5 = vpack.c.bf16 %v704_v3, %v703_v2  ;;  %v706_v6 = vld [vmem:[%s646_s22 + $0x18] sm:$0xff]  ;;  %2912 = vmatprep.subr.mxu0 %v3203_v10  ;;  %vm3204_vm2 = vmmov 0   ;;  %v2785_v11 = vld [vmem:[%s3685_s21] ss:$0 sm:$0xff]  ;;  %s3205_s0 = smov 120   ;;  %s3206_s1 = smov 96  }
  0x2f   : > { %v3027_v8 = vpack.c.bf16 %v706_v6, %v705_v4  ;;  %2914 = vmatprep.mubr.msk.f32.mxu0 %vm3204_vm2, %v3203_v10  ;;  %s3207_s17 = smov 80   ;;  %s3208_s25 = smov 88   ;;  %vm800_vm3 = vcmask 64512   ;;  %v877_v32 = vshrl.u32 %v876_v31, 7  ;;  %vm1482_vm4 = vcmask 130048  }
  0x30   : > { %3024 = vmatprep.subr.bf16.mxu1 %v3023_v5  ;;  %s3209_s20 = smov 72   ;;  %s3210_s30 = smov 112   ;;  %vm1484_vm5 = vcmask 195584   ;;  %vm2436_vm6 = vcmask 523264  }
  0x31   : > { %3026 = vmatpush3.bf16.msra.mxu1 %v3023_v5  ;;  %s3211_s18 = smov 104   ;;  %s3212_s24 = smov 56   ;;  %v878_v33 = vsub.s32 0, %v877_v32  ;;  %v1566_v50 = vsub.s32 1, %v877_v32 }
  0x32   : > { %3028 = vmatprep.subr.bf16.mxu1 %v3027_v8  ;;  %s3213_s26 = smov 64   ;;  %s3686_s28 = sld [smem:[#allocation8_spill]] }
  0x33   : > { %v3399_v7 = vld [vmem:[%s3684_s4] sm:$0xff]  ;;  %v3404_v9 = vld [vmem:[%s3684_s4 + $0x8] sm:$0xff]  ;;  %s3214_s22 = smov 40   ;;  %s3215_s21 = smov 48  }
  0x34   : > { %2899 = vmatprep.mubr.msk.f32.mxu1 %vm714_vm1, %v3399_v7 }
  0x35   : > { %3030 = vmatpush3.bf16.msra.mxu1 %v3027_v8 }
  0x36   : > { %2902 = vmatprep.subr.mxu1 %v3203_v10 }
  0x38   : > { %2900 = vmatmul.mubr.msk.f32.vlgmr.msra.gmra.mrb[0].mxu1 %vm714_vm1, %v3404_v9  ;;  %v796_v34 = vld [vmem:[%s3686_s28] sm:$0x3]  ;;  %s3689_s28 = scalar_lea.vmem %s3650_s7, %s3341_s15 }
  0x39   : > { %2904 = vmatprep.mubr.msk.f32.mxu1 %vm3204_vm2, %v3203_v10  ;;  %v879_v35 = vrot.slane %v796_v34, %v878_v33  ;;  %v1567_v56 = vrot.slane %v796_v34, %v1566_v50 }
 0x10b   : > { %v2901_v12 = vpop.f32.mrb[0].mxu1 }
 0x10c   : > { %v787_v13 = vpop.f32.mrb[1].mxu1  ;;  %v3427_v15 = vadd.f32 %v2901_v12, %v2785_v11 }
 0x10d   : > { %v3419_v14 = vadd.f32 %v2785_v11, %v787_v13 }
 0x10f   : > { %968 = vrot.lane.b32.xlu1 %v3419_v14, %s3205_s0  ;;  %798 = vrot.lane.b32.xlu0 %v3419_v14, %s3206_s1 }
 0x113   : > { %1137 = vrot.lane.b32.xlu1 %v3419_v14, %s3207_s17  ;;  %970 = vrot.lane.b32.xlu0 %v3419_v14, %s3208_s25 }
 0x117   : > { %1304 = vrot.lane.b32.xlu1 %v3419_v14, %s3209_s20  ;;  %1135 = vrot.lane.b32.xlu0 %v3419_v14, %s3210_s30 }
 0x11b   : > { %1487 = vrot.lane.b32.xlu1 %v3427_v15, %s3206_s1  ;;  %1302 = vrot.lane.b32.xlu0 %v3419_v14, %s3211_s18  ;;  %s3217_s1 = smov 16  }
 0x11f   : > { %1656 = vrot.lane.b32.xlu1 %v3427_v15, %s3205_s0  ;;  %1658 = vrot.lane.b32.xlu0 %v3427_v15, %s3208_s25  ;;  %s3216_s0 = smov 8  }
 0x123   : > { %1823 = vrot.lane.b32.xlu1 %v3427_v15, %s3210_s30  ;;  %1825 = vrot.lane.b32.xlu0 %v3427_v15, %s3207_s17  ;;  %s3218_s17 = smov 24  }
 0x127   : > { %1990 = vrot.lane.b32.xlu1 %v3427_v15, %s3211_s18  ;;  %1992 = vrot.lane.b32.xlu0 %v3427_v15, %s3209_s20  ;;  %s3687_s20 = scalar_lea.vmem %s3648_s5, %s3341_s15 }
 0x12b   : > { %1059 = vrot.lane.b32.xlu1 %v3419_v14, %s3212_s24  ;;  %892 = vrot.lane.b32.xlu0 %v3419_v14, %s3213_s26 }
 0x181   : > { %v969_v16 = vpop.permute.xlu1 %968  ;;  %v799_v17 = vpop.permute.xlu0 %798 }
 0x182   : > { %2903 = vmatpush3.xpose.msk.msra.mxu1 %vm800_vm3, %v799_v17 }
 0x183   : > { %2907 = vmatprep.subr.mxu1 %v3203_v10 }
 0x185   : > { %v1138_v18 = vpop.permute.xlu1 %1137  ;;  %2905 = vmatmul.mubr.msk.f32.vlgmr.msra.gmra.mrb[2].mxu1 %vm800_vm3, %v3419_v14  ;;  %v971_v19 = vpop.permute.xlu0 %970 }
 0x186   : > { %2913 = vmatpush3.xpose.msk.msra.mxu0 %vm800_vm3, %v971_v19  ;;  %2909 = vmatprep.mubr.msk.f32.mxu1 %vm3204_vm2, %v3203_v10 }
 0x187   : > { %2922 = vmatprep.subr.mxu0 %v3203_v10 }
 0x189   : > { %v1305_v20 = vpop.permute.xlu1 %1304  ;;  %2915 = vmatmul.mubr.msk.f32.vlgmr.msra.gmra.mrb[0].mxu0 %vm800_vm3, %v969_v16  ;;  %v1136_v21 = vpop.permute.xlu0 %1135 }
 0x18a   : > { %2923 = vmatpush3.xpose.msk.msra.mxu0 %vm800_vm3, %v1138_v18  ;;  %2924 = vmatprep.mubr.msk.f32.mxu0 %vm3204_vm2, %v3203_v10 }
 0x18b   : > { %2932 = vmatprep.subr.mxu0 %v3203_v10 }
 0x18d   : > { %2925 = vmatmul.mubr.msk.f32.vlgmr.msra.gmra.mrb[2].mxu0 %vm800_vm3, %v1136_v21  ;;  %v1303_v22 = vpop.permute.xlu0 %1302  ;;  %v1488_v23 = vpop.permute.xlu1 %1487 }
 0x18e   : > { %2933 = vmatpush3.xpose.msk.msra.mxu0 %vm800_vm3, %v1305_v20  ;;  %2934 = vmatprep.mubr.msk.f32.mxu0 %vm3204_vm2, %v3203_v10 }
 0x18f   : > { %2942 = vmatprep.subr.mxu0 %v3203_v10 }
 0x191   : > { %2935 = vmatmul.mubr.msk.f32.vlgmr.msra.gmra.mrb[4].mxu0 %vm800_vm3, %v1303_v22  ;;  %v1659_v24 = vpop.permute.xlu0 %1658  ;;  %v1657_v25 = vpop.permute.xlu1 %1656 }
 0x192   : > { %2943 = vmatpush3.xpose.msk.msra.mxu0 %vm800_vm3, %v1488_v23  ;;  %2944 = vmatprep.mubr.msk.f32.mxu0 %vm3204_vm2, %v3203_v10 }
 0x193   : > { %2952 = vmatprep.subr.mxu0 %v3203_v10 }
 0x195   : > { %2945 = vmatmul.mubr.msk.f32.vlgmr.msra.gmra.mrb[6].mxu0 %vm800_vm3, %v3427_v15  ;;  %v1826_v26 = vpop.permute.xlu0 %1825  ;;  %v1824_v28 = vpop.permute.xlu1 %1823 }
 0x196   : > { %2953 = vmatpush3.xpose.msk.msra.mxu0 %vm800_vm3, %v1659_v24  ;;  %2954 = vmatprep.mubr.msk.f32.mxu0 %vm3204_vm2, %v3203_v10 }
 0x197   : > { %2962 = vmatprep.subr.mxu0 %v3203_v10 }
 0x199   : > { %2955 = vmatmul.mubr.msk.f32.vlgmr.msra.gmra.mrb[8].mxu0 %vm800_vm3, %v1657_v25  ;;  %v1993_v27 = vpop.permute.xlu0 %1992  ;;  %v1991_v30 = vpop.permute.xlu1 %1990 }
 0x19a   : > { %2963 = vmatpush3.xpose.msk.msra.mxu0 %vm800_vm3, %v1826_v26  ;;  %2964 = vmatprep.mubr.msk.f32.mxu0 %vm3204_vm2, %v3203_v10 }
 0x19b   : > { %2972 = vmatprep.subr.mxu0 %v3203_v10 }
 0x19d   : > { %2965 = vmatmul.mubr.msk.f32.vlgmr.msra.gmra.mrb[10].mxu0 %vm800_vm3, %v1824_v28  ;;  %v893_v29 = vpop.permute.xlu0 %892  ;;  %v3494_v19 = vpop.permute.xlu1 %1059 }
 0x19e   : > { %2908 = vmatpush3.msra.mxu1 %v893_v29  ;;  %2973 = vmatpush3.xpose.msk.msra.mxu0 %vm800_vm3, %v1993_v27 }
 0x19f   : > { %2974 = vmatprep.mubr.msk.f32.mxu0 %vm3204_vm2, %v3203_v10  ;;  %2917 = vmatprep.subr.mxu1 %v3203_v10 }
 0x1a1   : > { %2975 = vmatmul.mubr.msk.f32.vlgmr.msra.gmra.mrb[12].mxu0 %vm800_vm3, %v1991_v30 }
 0x258   : > { %v871_v36 = vpop.f32.mrb[2].mxu1 }
 0x259   : > { %v875_v37 = vmul.f32 0.35355338, %v871_v36  ;;  %v2906_v38 = vpop.f32.mrb[3].mxu1 }
 0x25b   : > { %v880_v39 = vadd.f32 %v879_v35, %v875_v37 }
 0x25c   : > { %v1042_v40 = vpop.f32.mrb[0].mxu0 }
 0x25d   : > { %v1046_v41 = vmul.f32 0.35355338, %v1042_v40  ;;  %v2916_v42 = vpop.f32.mrb[1].mxu0  ;;  %v881_v43 = vsel %vm800_vm3, %v880_v39, -inf }
 0x25e   : > { %882 = vmax.xlane.f32.xlu0 %v881_v43 }
 0x25f   : > { %v1047_v44 = vadd.f32 %v1046_v41, %v879_v35 }
 0x260   : > { %v1209_v45 = vpop.f32.mrb[2].mxu0 }
 0x261   : > { %v1213_v46 = vmul.f32 0.35355338, %v1209_v45  ;;  %v2926_v47 = vpop.f32.mrb[3].mxu0  ;;  %v1048_v48 = vsel %vm800_vm3, %v1047_v44, -inf }
 0x262   : > { %1049 = vmax.xlane.f32.xlu1 %v1048_v48 }
 0x263   : > { %v1214_v49 = vadd.f32 %v1213_v46, %v879_v35 }
 0x264   : > { %v1376_v51 = vpop.f32.mrb[4].mxu0 }
 0x265   : > { %v1380_v52 = vmul.f32 0.35355338, %v1376_v51  ;;  %v2936_v53 = vpop.f32.mrb[5].mxu0  ;;  %v1215_v54 = vsel %vm800_vm3, %v1214_v49, -inf }
 0x266   : > { %1216 = vmax.xlane.f32.xlu0 %v1215_v54 }
 0x267   : > { %v1381_v55 = vadd.f32 %v1380_v52, %v879_v35 }
 0x268   : > { %v1559_v57 = vpop.f32.mrb[6].mxu0 }
 0x269   : > { %v1563_v58 = vmul.f32 0.35355338, %v1559_v57  ;;  %v2946_v59 = vpop.f32.mrb[7].mxu0  ;;  %v1382_v60 = vsel %vm800_vm3, %v1381_v55, -inf }
 0x26a   : > { %1383 = vmax.xlane.f32.xlu0 %v1382_v60 }
 0x26b   : > { %v1568_v61 = vadd.f32 %v1567_v56, %v1563_v58 }
 0x26c   : > { %v1730_v62 = vpop.f32.mrb[8].mxu0 }
 0x26d   : > { %v1734_v63 = vmul.f32 0.35355338, %v1730_v62  ;;  %v2956_v0 = vpop.f32.mrb[9].mxu0  ;;  %v1569_v1 = vsel %vm800_vm3, %v1568_v61, -inf }
 0x26e   : > { %1570 = vmax.xlane.f32.xlu1 %v1569_v1 }
 0x26f   : > { %v1735_v2 = vadd.f32 %v1734_v63, %v1567_v56 }
 0x270   : > { %v1897_v3 = vpop.f32.mrb[10].mxu0 }
 0x271   : > { %v1901_v4 = vmul.f32 0.35355338, %v1897_v3  ;;  %v2966_v5 = vpop.f32.mrb[11].mxu0  ;;  %v1736_v6 = vsel %vm800_vm3, %v1735_v2, -inf }
 0x272   : > { %1737 = vmax.xlane.f32.xlu0 %v1736_v6 }
 0x273   : > { %v1902_v8 = vadd.f32 %v1901_v4, %v1567_v56 }
 0x274   : > { %v2064_v11 = vpop.f32.mrb[12].mxu0 }
 0x275   : > { %v2068_v12 = vmul.f32 0.35355338, %v2064_v11  ;;  %v2976_v13 = vpop.f32.mrb[13].mxu0  ;;  %v1903_v16 = vsel %vm800_vm3, %v1902_v8, -inf }
 0x276   : > { %1904 = vmax.xlane.f32.xlu1 %v1903_v16 }
 0x277   : > { %v2069_v17 = vadd.f32 %v2068_v12, %v1567_v56 }
 0x279   : > { %v2070_v18 = vsel %vm800_vm3, %v2069_v17, -inf }
 0x27a   : > { %2071 = vmax.xlane.f32.xlu0 %v2070_v18 }
 0x287   : > { %1393 = vrot.lane.b32.xlu1 %v3419_v14, %s3214_s22 }
 0x290   : > { %1226 = vrot.lane.b32.xlu0 %v3419_v14, %s3215_s21 }
 0x2eb   : > { %v883_v20 = vpop.xlane.xlu0 %882 }
 0x2ec   : > { %v884_v21 = vsub.f32 %v880_v39, %v883_v20 }
 0x2ee   : > { %v885_v22 = vmul.f32 1.442695, %v884_v21 }
 0x2ef   : > { %v1050_v23 = vpop.xlane.xlu1 %1049 }
 0x2f0   : > { %3119 = vpow2.f32 %v885_v22  ;;  %v1051_v24 = vsub.f32 %v1047_v44, %v1050_v23 }
 0x2f2   : > { %v1052_v25 = vmul.f32 1.442695, %v1051_v24 }
 0x2f3   : > { %v1217_v26 = vpop.xlane.xlu0 %1216 }
 0x2f4   : > { %3121 = vpow2.f32 %v1052_v25  ;;  %v1218_v27 = vsub.f32 %v1214_v49, %v1217_v26 }
 0x2f6   : > { %v1219_v28 = vmul.f32 1.442695, %v1218_v27 }
 0x2f7   : > { %v1384_v29 = vpop.xlane.xlu0 %1383 }
 0x2f8   : > { %3123 = vpow2.f32 %v1219_v28  ;;  %v1385_v30 = vsub.f32 %v1381_v55, %v1384_v29 }
 0x2fa   : > { %v3120_v31 = vpop.eup %3119  ;;  %v1386_v32 = vmul.f32 1.442695, %v1385_v30 }
 0x2fb   : > { %v887_v14 = vsel %vm800_vm3, %v3120_v31, 0.0  ;;  %v1571_v39 = vpop.xlane.xlu1 %1570 }
 0x2fc   : > { %3125 = vpow2.f32 %v1386_v32  ;;  %888 = vadd.xlane.f32.xlu1 %v887_v14  ;;  %v1572_v40 = vsub.f32 %v1568_v61, %v1571_v39  ;;  %v2175_v39 = vld [vmem:[%s3354_s27 + $0x18] sm:$0xff] }
 0x2fe   : > { %v3122_v33 = vpop.eup %3121  ;;  %v1573_v44 = vmul.f32 1.442695, %v1572_v40 }
 0x2ff   : > { %v1054_v34 = vsel %vm800_vm3, %v3122_v33, 0.0  ;;  %v1738_v41 = vpop.xlane.xlu0 %1737 }
 0x300   : > { %1055 = vadd.xlane.f32.xlu0 %v1054_v34  ;;  %v1739_v43 = vsub.f32 %v1735_v2, %v1738_v41  ;;  %3127 = vpow2.f32 %v1573_v44 }
 0x302   : > { %v3124_v35 = vpop.eup %3123  ;;  %v1740_v47 = vmul.f32 1.442695, %v1739_v43 }
 0x303   : > { %v1221_v36 = vsel %vm800_vm3, %v3124_v35, 0.0  ;;  %v1905_v42 = vpop.xlane.xlu1 %1904 }
 0x304   : > { %1222 = vadd.xlane.f32.xlu1 %v1221_v36  ;;  %v1906_v45 = vsub.f32 %v1902_v8, %v1905_v42  ;;  %3129 = vpow2.f32 %v1740_v47  ;;  %v2173_v36 = vld [vmem:[%s3354_s27 + $0x8] sm:$0xff] }
 0x306   : > { %v3499_v37 = vpop.eup %3125  ;;  %v1907_v48 = vmul.f32 1.442695, %v1906_v45 }
 0x307   : > { %v1388_v38 = vsel %vm800_vm3, %v3499_v37, 0.0  ;;  %v2072_v46 = vpop.xlane.xlu0 %2071  ;;  %v1394_v59 = vpop.permute.xlu1 %1393 }
 0x308   : > { %1389 = vadd.xlane.f32.xlu0 %v1388_v38  ;;  %v2073_v49 = vsub.f32 %v2069_v17, %v2072_v46  ;;  %3131 = vpow2.f32 %v1907_v48  ;;  %v2174_v38 = vld [vmem:[%s3354_s27 + $0x10] sm:$0xff] }
 0x309   : > { %v3035_v40 = vpack.c.bf16 %v2175_v39, %v2174_v38  ;;  %v2421_v38 = vld [vmem:[%s3381_s14] sm:$0xff]  ;;  %v2422_v39 = vld [vmem:[%s3381_s14 + $0x8] sm:$0xff] }
 0x30a   : > { %v2074_v50 = vmul.f32 1.442695, %v2073_v49  ;;  %v3128_v51 = vpop.eup %3127 }
 0x30b   : > { %v1575_v53 = vsel %vm800_vm3, %v3128_v51, 0.0  ;;  %v1227_v60 = vpop.permute.xlu0 %1226 }
 0x30c   : > { %3133 = vpow2.f32 %v2074_v50 }
 0x30e   : > { %v3507_v52 = vpop.eup %3129 }
 0x30f   : > { %v1742_v56 = vsel %vm800_vm3, %v3507_v52, 0.0 }
 0x312   : > { %v3510_v54 = vpop.eup %3131 }
 0x313   : > { %v1909_v55 = vsel %vm800_vm3, %v3510_v54, 0.0 }
 0x315   : > { %1747 = vrot.lane.b32.xlu1 %v3427_v15, %s3212_s24  ;;  %s3688_s24 = scalar_lea.vmem %s3649_s6, %s3341_s15 }
 0x316   : > { %v3516_v57 = vpop.eup %3133 }
 0x317   : > { %v2076_v58 = vsel %vm800_vm3, %v3516_v57, 0.0 }
 0x31e   : > { %1580 = vrot.lane.b32.xlu0 %v3427_v15, %s3213_s26 }
 0x339   : > { %1576 = vadd.xlane.f32.xlu1 %v1575_v53 }
 0x33d   : > { %1910 = vadd.xlane.f32.xlu1 %v1909_v55  ;;  %1743 = vadd.xlane.f32.xlu0 %v1742_v56 }
 0x341   : > { %2077 = vadd.xlane.f32.xlu1 %v2076_v58 }
 0x352   : > { %2081 = vrot.lane.b32.xlu1 %v3427_v15, %s3214_s22 }
 0x353   : > { %1914 = vrot.lane.b32.xlu0 %v3427_v15, %s3215_s21 }
 0x389   : > { %v889_v61 = vpop.xlane.xlu1 %888 }
 0x38a   : > { %3135 = vrcp.f32 %v889_v61  ;;  %v2812_v61 = vld [vmem:[%s3687_s20] ss:$0 sm:$0xff] }
 0x38d   : > { %v1056_v62 = vpop.xlane.xlu0 %1055 }
 0x38e   : > { %3137 = vrcp.f32 %v1056_v62 }
 0x391   : > { %v1223_v63 = vpop.xlane.xlu1 %1222 }
 0x392   : > { %3139 = vrcp.f32 %v1223_v63 }
 0x394   : > { %v3136_v0 = vpop.eup %3135 }
 0x395   : > { %v891_v1 = vmul.f32 %v3136_v0, %v3120_v31  ;;  %v1390_v2 = vpop.xlane.xlu0 %1389  ;;  %v1748_v12 = vpop.permute.xlu1 %1747 }
 0x396   : > { %3141 = vrcp.f32 %v1390_v2 }
 0x397   : > { %2910 = vmatmul.mubr.msk.f32.vlgmr.msra.gmra.mrb[4].mxu1 %vm800_vm3, %v891_v1 }
 0x398   : > { %v3138_v3 = vpop.eup %3137  ;;  %2918 = vmatpush3.msra.mxu1 %v3494_v19  ;;  %2919 = vmatprep.mubr.msk.f32.mxu1 %vm3204_vm2, %v3203_v10 }
 0x399   : > { %v1058_v15 = vmul.f32 %v3138_v3, %v3122_v33  ;;  %2927 = vmatprep.subr.mxu1 %v3203_v10  ;;  %v1581_v11 = vpop.permute.xlu0 %1580 }
 0x39b   : > { %2920 = vmatmul.mubr.msk.f32.vlgmr.msra.gmra.mrb[6].mxu1 %vm800_vm3, %v1058_v15 }
 0x39c   : > { %v3140_v4 = vpop.eup %3139  ;;  %2928 = vmatpush3.msra.mxu1 %v1227_v60  ;;  %2929 = vmatprep.mubr.msk.f32.mxu1 %vm3204_vm2, %v3203_v10 }
 0x39d   : > { %v1225_v5 = vmul.f32 %v3140_v4, %v3124_v35  ;;  %2937 = vmatprep.subr.mxu1 %v3203_v10  ;;  %v2172_v35 = vld [vmem:[%s3354_s27] sm:$0xff] }
 0x39f   : > { %2930 = vmatmul.mubr.msk.f32.vlgmr.msra.gmra.mrb[8].mxu1 %vm800_vm3, %v1225_v5 }
 0x3a0   : > { %v3142_v6 = vpop.eup %3141  ;;  %2938 = vmatpush3.msra.mxu1 %v1394_v59  ;;  %2939 = vmatprep.mubr.msk.f32.mxu1 %vm3204_vm2, %v3203_v10 }
 0x3a1   : > { %v1392_v8 = vmul.f32 %v3142_v6, %v3499_v37  ;;  %2947 = vmatprep.subr.mxu1 %v3203_v10  ;;  %v3031_v37 = vpack.c.bf16 %v2173_v36, %v2172_v35 }
 0x3a3   : > { %2940 = vmatmul.mubr.msk.f32.vlgmr.msra.gmra.mrb[10].mxu1 %vm800_vm3, %v1392_v8  ;;  %3032 = vmatprep.subr.bf16.mxu0 %v3031_v37 }
 0x3a4   : > { %2948 = vmatpush3.msra.mxu1 %v1581_v11  ;;  %2949 = vmatprep.mubr.msk.f32.mxu1 %vm3204_vm2, %v3203_v10 }
 0x3a5   : > { %2957 = vmatprep.subr.mxu1 %v3203_v10  ;;  %3034 = vmatpush3.bf16.msra.mxu0 %v3031_v37 }
 0x3a6   : > { %3036 = vmatprep.subr.bf16.mxu0 %v3035_v40 }
 0x3a9   : > { %3038 = vmatpush3.bf16.msra.mxu0 %v3035_v40  ;;  %v3047_v40 = vpack.c.bf16 %v2422_v39, %v2421_v38  ;;  %v2824_v39 = vld [vmem:[%s685_s16] ss:$0 sm:$0xff] }
 0x3ab   : > { %3048 = vmatprep.subr.bf16.mxu0 %v3047_v40 }
 0x3c6   : > { %v1577_v13 = vpop.xlane.xlu1 %1576 }
 0x3c7   : > { %3143 = vrcp.f32 %v1577_v13 }
 0x3ca   : > { %v1911_v16 = vpop.xlane.xlu1 %1910  ;;  %v1744_v17 = vpop.xlane.xlu0 %1743 }
 0x3cb   : > { %3145 = vrcp.f32 %v1744_v17 }
 0x3cc   : > { %3147 = vrcp.f32 %v1911_v16 }
 0x3ce   : > { %v2078_v18 = vpop.xlane.xlu1 %2077  ;;  %v1915_v24 = vpop.permute.xlu0 %1914 }
 0x3cf   : > { %3149 = vrcp.f32 %v2078_v18  ;;  %v2311_v18 = vld [vmem:[%s3371_s19] sm:$0xff] }
 0x3d1   : > { %v3144_v19 = vpop.eup %3143 }
 0x3d2   : > { %v1579_v20 = vmul.f32 %v3144_v19, %v3128_v51  ;;  %v2082_v27 = vpop.permute.xlu1 %2081  ;;  %v2312_v19 = vld [vmem:[%s3371_s19 + $0x8] sm:$0xff] }
 0x3d4   : > { %2950 = vmatmul.mubr.msk.f32.vlgmr.msra.gmra.mrb[12].mxu1 %vm800_vm3, %v1579_v20  ;;  %v3039_v20 = vpack.c.bf16 %v2312_v19, %v2311_v18 }
 0x3d5   : > { %2958 = vmatpush3.msra.mxu1 %v1748_v12  ;;  %2959 = vmatprep.mubr.msk.f32.mxu1 %vm3204_vm2, %v3203_v10  ;;  %v3146_v21 = vpop.eup %3145 }
 0x3d6   : > { %2967 = vmatprep.subr.mxu1 %v3203_v10  ;;  %v1746_v22 = vmul.f32 %v3146_v21, %v3507_v52  ;;  %v3148_v23 = vpop.eup %3147  ;;  %v2313_v21 = vld [vmem:[%s3371_s19 + $0x10] sm:$0xff] }
 0x3d7   : > { %v1913_v25 = vmul.f32 %v3148_v23, %v3510_v54 }
 0x3d8   : > { %2960 = vmatmul.mubr.msk.f32.vlgmr.msra.gmra.mrb[14].mxu1 %vm800_vm3, %v1746_v22  ;;  %v2314_v22 = vld [vmem:[%s3371_s19 + $0x18] sm:$0xff] }
 0x3d9   : > { %2968 = vmatpush3.msra.mxu1 %v1915_v24  ;;  %2969 = vmatprep.mubr.msk.f32.mxu1 %vm3204_vm2, %v3203_v10  ;;  %v3150_v26 = vpop.eup %3149  ;;  %v3043_v23 = vpack.c.bf16 %v2314_v22, %v2313_v21 }
 0x3da   : > { %2977 = vmatprep.subr.mxu1 %v3203_v10  ;;  %v2080_v28 = vmul.f32 %v3150_v26, %v3516_v57 }
 0x3dc   : > { %2970 = vmatmul.mubr.msk.f32.vlgmr.msra.gmra.mrb[16].mxu1 %vm800_vm3, %v1913_v25 }
 0x3dd   : > { %2978 = vmatpush3.msra.mxu1 %v2082_v27  ;;  %2979 = vmatprep.mubr.msk.f32.mxu1 %vm3204_vm2, %v3203_v10 }
 0x3de   : > { %3040 = vmatprep.subr.bf16.mxu1 %v3039_v20 }
 0x3e0   : > { %2980 = vmatmul.mubr.msk.f32.vlgmr.msra.gmra.mrb[18].mxu1 %vm800_vm3, %v2080_v28 }
 0x3e1   : > { %3042 = vmatpush3.bf16.msra.mxu1 %v3039_v20 }
 0x3e2   : > { %3044 = vmatprep.subr.bf16.mxu1 %v3043_v23 }
 0x3e5   : > { %3046 = vmatpush3.bf16.msra.mxu1 %v3043_v23 }
 0x46a   : > { %v964_v29 = vpop.f32.mrb[4].mxu1 }
 0x46b   : > { %v2911_v30 = vpop.f32.mrb[5].mxu1 }
 0x46e   : > { %v1131_v31 = vpop.f32.mrb[6].mxu1 }
 0x46f   : > { %1470 = vrot.lane.b32.xlu0 %v1131_v31, %s3216_s0  ;;  %v2921_v32 = vpop.f32.mrb[7].mxu1  ;;  %v2815_v31 = vld [vmem:[%s3688_s24] ss:$0 sm:$0xff] }
 0x472   : > { %v1298_v14 = vpop.f32.mrb[8].mxu1 }
 0x473   : > { %1474 = vrot.lane.b32.xlu1 %v1298_v14, %s3217_s1  ;;  %v2931_v33 = vpop.f32.mrb[9].mxu1  ;;  %v2816_v14 = vld [vmem:[%s3689_s28] ss:$0 sm:$0xff] }
 0x476   : > { %v1465_v34 = vpop.f32.mrb[10].mxu1 }
 0x477   : > { %1478 = vrot.lane.b32.xlu1 %v1465_v34, %s3218_s17  ;;  %v2941_v10 = vpop.f32.mrb[11].mxu1 }
 0x4a7   : > { %v1652_v41 = vpop.f32.mrb[12].mxu1 }
 0x4a8   : > { %v2951_v42 = vpop.f32.mrb[13].mxu1 }
 0x4a9   : > { %v2424_v42 = vld [vmem:[%s3381_s14 + $0x18] sm:$0xff] }
 0x4ab   : > { %v1819_v43 = vpop.f32.mrb[14].mxu1 }
 0x4ac   : > { %2158 = vrot.lane.b32.xlu0 %v1819_v43, %s3216_s0  ;;  %v2961_v44 = vpop.f32.mrb[15].mxu1 }
 0x4ad   : > { %v2425_v44 = vld [vmem:[%s3381_s14 + $0x20] sm:$0xff] }
 0x4af   : > { %v1986_v45 = vpop.f32.mrb[16].mxu1 }
 0x4b0   : > { %2162 = vrot.lane.b32.xlu0 %v1986_v45, %s3217_s1  ;;  %v2971_v46 = vpop.f32.mrb[17].mxu1  ;;  %v2426_v45 = vld [vmem:[%s3381_s14 + $0x28] sm:$0xff] }
 0x4b1   : > { %v3055_v46 = vpack.c.bf16 %v2426_v45, %v2425_v44 }
 0x4b3   : > { %v2153_v47 = vpop.f32.mrb[18].mxu1 }
 0x4b4   : > { %2166 = vrot.lane.b32.xlu1 %v2153_v47, %s3218_s17  ;;  %v2981_v48 = vpop.f32.mrb[19].mxu1  ;;  %v2427_v47 = vld [vmem:[%s3381_s14 + $0x30] sm:$0xff] }
 0x4b5   : > { %v2428_v48 = vld [vmem:[%s3381_s14 + $0x38] sm:$0xff] }
 0x4e1   : > { %v1471_v49 = vpop.permute.xlu0 %1470 }
 0x4e2   : > { %v1481_v51 = vsel %vm800_vm3, %v964_v29, %v1471_v49  ;;  %v3059_v49 = vpack.c.bf16 %v2428_v48, %v2427_v47 }
 0x4e5   : > { %v1475_v50 = vpop.permute.xlu1 %1474 }
 0x4e6   : > { %v1483_v52 = vsel %vm1482_vm4, %v1481_v51, %v1475_v50  ;;  %v2817_v50 = vld [vmem:[%s671_s2] ss:$0 sm:$0xff] }
 0x4e9   : > { %v1479_v53 = vpop.permute.xlu1 %1478 }
 0x4ea   : > { %v1485_v54 = vsel %vm1484_vm5, %v1483_v52, %v1479_v53 }
 0x4eb   : > { %2990 = vmatprep.mubr.msk.f32.mxu0 %vm714_vm1, %v1485_v54 }
 0x51e   : > { %v2159_v55 = vpop.permute.xlu0 %2158 }
 0x51f   : > { %v2169_v57 = vsel %vm800_vm3, %v1652_v41, %v2159_v55  ;;  %v2423_v41 = vld [vmem:[%s3381_s14 + $0x10] sm:$0xff] }
 0x520   : > { %v3051_v43 = vpack.c.bf16 %v2424_v42, %v2423_v41 }
 0x522   : > { %v2163_v56 = vpop.permute.xlu0 %2162 }
 0x523   : > { %v2170_v58 = vsel %vm1482_vm4, %v2169_v57, %v2163_v56 }
 0x526   : > { %v2167_v59 = vpop.permute.xlu1 %2166 }
 0x527   : > { %v2171_v60 = vsel %vm1484_vm5, %v2170_v58, %v2167_v59 }
 0x528   : > { %2991 = vmatmul.mubr.msk.f32.vlgmr.msra.gmra.mrb[14].mxu0 %vm714_vm1, %v2171_v60 }
 0x529   : > { %3050 = vmatpush3.bf16.msra.mxu0 %v3047_v40 }
 0x52a   : > { %3052 = vmatprep.subr.bf16.mxu0 %v3051_v43 }
 0x52d   : > { %3054 = vmatpush3.bf16.msra.mxu0 %v3051_v43 }
 0x52e   : > { %3056 = vmatprep.subr.bf16.mxu0 %v3055_v46 }
 0x531   : > { %3058 = vmatpush3.bf16.msra.mxu0 %v3055_v46 }
 0x532   : > { %3060 = vmatprep.subr.bf16.mxu0 %v3059_v49 }
 0x535   : > { %3062 = vmatpush3.bf16.msra.mxu0 %v3059_v49 }
 0x5fb   : > { %v2992_v62 = vpop.f32.mrb[14].mxu0 }
 0x5fc   : > { %v2261_v63 = vadd.f32 %v2992_v62, %v2812_v61  ;;  %v2255_v0 = vpop.f32.mrb[15].mxu0 }
 0x5fd   : > { %v2256_v1 = vadd.f32 %v2812_v61, %v2255_v0 }
 0x5fe   : > { %v2265_v2 = vadd.f32 %v2261_v63, %v3404_v9 }
 0x5ff   : > { %v2264_v3 = vadd.f32 %v2256_v1, %v3399_v7 }
 0x600   : > { %v2271_v15 = vsel %vm714_vm1, %v2265_v2, 0.0 }
 0x601   : > { %2272 = vadd.xlane.f32.xlu1 %v2271_v15  ;;  %v2268_v4 = vsel %vm714_vm1, %v2264_v3, 0.0 }
 0x602   : > { %2269 = vadd.xlane.f32.xlu0 %v2268_v4 }
 0x68e   : > { %v2273_v5 = vpop.xlane.xlu1 %2272 }
 0x68f   : > { %v2276_v6 = vmul.f32 0.03125, %v2273_v5  ;;  %v2270_v8 = vpop.xlane.xlu0 %2269 }
 0x690   : > { %v2275_v11 = vmul.f32 0.03125, %v2270_v8 }
 0x691   : > { %v2278_v12 = vsub.f32 %v2265_v2, %v2276_v6 }
 0x692   : > { %v2277_v13 = vsub.f32 %v2264_v3, %v2275_v11  ;;  %v2820_v11 = vld [vmem:[%s679_s29] ss:$0 sm:$0xff] }
 0x693   : > { %v2280_v7 = vmul.f32 %v2278_v12, %v2278_v12 }
 0x694   : > { %v2279_v16 = vmul.f32 %v2277_v13, %v2277_v13 }
 0x695   : > { %v2284_v17 = vsel %vm714_vm1, %v2280_v7, 0.0 }
 0x696   : > { %v2281_v9 = vsel %vm714_vm1, %v2279_v16, 0.0 }
 0x697   : > { %2282 = vadd.xlane.f32.xlu0 %v2281_v9 }
 0x69b   : > { %2285 = vadd.xlane.f32.xlu0 %v2284_v17 }
 0x724   : > { %v2283_v24 = vpop.xlane.xlu0 %2282 }
 0x725   : > { %v2287_v25 = vmul.f32 0.03125, %v2283_v24 }
 0x727   : > { %v2289_v26 = vadd.f32 1e-12, %v2287_v25 }
 0x728   : > { %v2286_v27 = vpop.xlane.xlu0 %2285 }
 0x729   : > { %3151 = vrsqrt.f32 %v2289_v26  ;;  %v2288_v28 = vmul.f32 0.03125, %v2286_v27 }
 0x72b   : > { %v2290_v29 = vadd.f32 1e-12, %v2288_v28 }
 0x72d   : > { %3153 = vrsqrt.f32 %v2290_v29 }
 0x733   : > { %v3152_v30 = vpop.eup %3151 }
 0x734   : > { %v2293_v32 = vmul.f32 %v3152_v30, %v2277_v13 }
 0x736   : > { %v2301_v33 = vmul.f32 %v2815_v31, %v2293_v32 }
 0x737   : > { %v3154_v34 = vpop.eup %3153 }
 0x738   : > { %v2294_v10 = vmul.f32 %v3154_v34, %v2278_v12  ;;  %v2309_v35 = vadd.f32 %v2816_v14, %v2301_v33 }
 0x73a   : > { %v2302_v36 = vmul.f32 %v2815_v31, %v2294_v10  ;;  %3001 = vmatprep.mubr.msk.f32.mxu1 %vm714_vm1, %v2309_v35 }
 0x73c   : > { %v2310_v37 = vadd.f32 %v2816_v14, %v2302_v36 }
 0x73e   : > { %3002 = vmatmul.mubr.msk.f32.vlgmr.msra.gmra.mrb[20].mxu1 %vm714_vm1, %v2310_v37 }
 0x811   : > { %v3003_v51 = vpop.f32.mrb[20].mxu1 }
 0x812   : > { %v2400_v52 = vadd.f32 %v3003_v51, %v2817_v50  ;;  %v2394_v53 = vpop.f32.mrb[21].mxu1 }
 0x813   : > { %v2395_v54 = vadd.f32 %v2817_v50, %v2394_v53 }
 0x814   : > { %v2404_v55 = vmul.f32 %v2400_v52, %v2400_v52 }
 0x815   : > { %v2403_v56 = vmul.f32 %v2395_v54, %v2395_v54 }
 0x816   : > { %v2406_v57 = vmul.f32 %v2404_v55, %v2400_v52 }
 0x817   : > { %v2405_v58 = vmul.f32 %v2403_v56, %v2395_v54 }
 0x818   : > { %v2408_v59 = vmul.f32 0.044715, %v2406_v57 }
 0x819   : > { %v2407_v60 = vmul.f32 0.044715, %v2405_v58 }
 0x81a   : > { %v2410_v61 = vadd.f32 %v2408_v59, %v2400_v52 }
 0x81b   : > { %v2409_v62 = vadd.f32 %v2407_v60, %v2395_v54 }
 0x81c   : > { %v2412_v63 = vmul.f32 0.7978846, %v2410_v61 }
 0x81d   : > { %v2411_v0 = vmul.f32 0.7978846, %v2409_v62 }
 0x81e   : > { %3155 = vtanh.f32 %v2412_v63 }
 0x81f   : > { %3157 = vtanh.f32 %v2411_v0 }
 0x828   : > { %v3156_v1 = vpop.eup %3155 }
 0x829   : > { %v3158_v2 = vpop.eup %3157  ;;  %v2416_v3 = vadd.f32 1.0, %v3156_v1 }
 0x82a   : > { %v2415_v15 = vadd.f32 1.0, %v3158_v2 }
 0x82b   : > { %v2418_v4 = vmul.f32 0.5, %v2416_v3 }
 0x82c   : > { %v2417_v5 = vmul.f32 0.5, %v2415_v15 }
 0x82d   : > { %v2420_v8 = vmul.f32 %v2418_v4, %v2400_v52 }
 0x82e   : > { %v2419_v6 = vmul.f32 %v2417_v5, %v2395_v54 }
 0x830   : > { %3020 = vmatprep.mubr.msk.f32.mxu0 %vm2436_vm6, %v2419_v6 }
 0x831   : > { %3021 = vmatmul.mubr.msk.f32.vlgmr.msra.gmra.mrb[16].mxu0 %vm2436_vm6, %v2420_v8 }
 0x904   : > { %v3022_v12 = vpop.f32.mrb[16].mxu0 }
 0x905   : > { %v2515_v13 = vadd.f32 %v3022_v12, %v2820_v11  ;;  %v2509_v16 = vpop.f32.mrb[17].mxu0 }
 0x906   : > { %v2510_v9 = vadd.f32 %v2820_v11, %v2509_v16 }
 0x907   : > { %v2519_v7 = vadd.f32 %v2515_v13, %v2310_v37 }
 0x908   : > { %v2518_v17 = vadd.f32 %v2510_v9, %v2309_v35  ;;  %v2823_v35 = vld [vmem:[%s682_s23] ss:$0 sm:$0xff] }
 0x909   : > { %v2525_v18 = vsel %vm714_vm1, %v2519_v7, 0.0 }
 0x90a   : > { %2526 = vadd.xlane.f32.xlu0 %v2525_v18  ;;  %v2522_v19 = vsel %vm714_vm1, %v2518_v17, 0.0 }
 0x90b   : > { %2523 = vadd.xlane.f32.xlu1 %v2522_v19 }
 0x997   : > { %v2527_v20 = vpop.xlane.xlu0 %2526 }
 0x998   : > { %v2529_v21 = vmul.f32 0.03125, %v2527_v20  ;;  %v2524_v22 = vpop.xlane.xlu1 %2523 }
 0x999   : > { %v2528_v23 = vmul.f32 0.03125, %v2524_v22 }
 0x99a   : > { %v2531_v24 = vsub.f32 %v2519_v7, %v2529_v21 }
 0x99b   : > { %v2530_v25 = vsub.f32 %v2518_v17, %v2528_v23 }
 0x99c   : > { %v2533_v26 = vmul.f32 %v2531_v24, %v2531_v24 }
 0x99d   : > { %v2532_v27 = vmul.f32 %v2530_v25, %v2530_v25 }
 0x99e   : > { %v2537_v28 = vsel %vm714_vm1, %v2533_v26, 0.0 }
 0x99f   : > { %2538 = vadd.xlane.f32.xlu0 %v2537_v28  ;;  %v2534_v29 = vsel %vm714_vm1, %v2532_v27, 0.0 }
 0x9a0   : > { %2535 = vadd.xlane.f32.xlu1 %v2534_v29 }
 0xa2c   : > { %v2539_v30 = vpop.xlane.xlu0 %2538 }
 0xa2d   : > { %v2541_v31 = vmul.f32 0.03125, %v2539_v30  ;;  %v2536_v32 = vpop.xlane.xlu1 %2535 }
 0xa2e   : > { %v2540_v14 = vmul.f32 0.03125, %v2536_v32 }
 0xa2f   : > { %v2543_v33 = vadd.f32 1e-12, %v2541_v31 }
 0xa30   : > { %v2542_v34 = vadd.f32 1e-12, %v2540_v14 }
 0xa31   : > { %3159 = vrsqrt.f32 %v2543_v33 }
 0xa32   : > { %3161 = vrsqrt.f32 %v2542_v34 }
 0xa3b   : > { %v3160_v10 = vpop.eup %3159 }
 0xa3c   : > { %v3162_v36 = vpop.eup %3161  ;;  %v2547_v37 = vmul.f32 %v3160_v10, %v2531_v24 }
 0xa3d   : > { %v2546_v38 = vmul.f32 %v3162_v36, %v2530_v25 }
 0xa3e   : > { %v2555_v40 = vmul.f32 %v2823_v35, %v2547_v37 }
 0xa3f   : > { %v2554_v41 = vmul.f32 %v2823_v35, %v2546_v38 }
 0xa40   : > { %v2563_v43 = vadd.f32 %v2824_v39, %v2555_v40 }
 0xa41   : > { %v2562_v42 = vadd.f32 %v2824_v39, %v2554_v41 }
 0xa42   : > { %2565 = vst.msk [vmem:[%s3684_s4 + $0x8] sm:$0xff] %vm714_vm1, %v2563_v43 }
 0xa43   : > { %2564 = vst.msk [vmem:[%s3684_s4] sm:$0xff] %vm714_vm1, %v2562_v42 }
 0xa44 PF: > { %s3690_s27 = sld [smem:[#allocation5_spill]]  ;;  %s3691_s29 = sld [smem:[#allocation3_spill]] }
 0xa45   : > { %s3692_s30 = sld [smem:[#allocation4_spill]]  ;;  %s3693_s15 = sld [smem:[#allocation6_spill]] }
 0xa46   : > { %s3694_s16 = sld [smem:[#allocation7_spill]] }
 0xa4a   : > { %s24_s17 = sadd.s32 1, %s3690_s27  }
 0xa4b   : > { %p21_p9 = scmp.ge.s32.totalorder %s24_s17, 6  }
 0xa4d   :  { %23 = sbr.rel (!%p21_p9) target bundleno = 6 (0x6), region = 149 }

</bundles_post_ra>
